<compile_context>
chip_gen: v7x
topology: tpu7x:2x2x1
jax: 0.10.0
libtpu: 0.0.40
codegen_flags: <defaults>
</compile_context>

<pallas_src>
import functools
import math

import jax
import jax.numpy as jnp
from jax.experimental import pallas as pl
from jax.experimental.pallas import tpu as pltpu


# ----------------------------- shared helpers --------------------------------

def _layer_norm(x, g, b, eps):
    mu = jnp.mean(x, axis=-1, keepdims=True)
    xc = x - mu
    var = jnp.mean(xc * xc, axis=-1, keepdims=True)
    return xc * jax.lax.rsqrt(var + eps) * g + b


def _kernel_activation(x, name):
    if name == "gelu":
        # tanh-form GELU: the transcendental issues on the EUP slot.
        c0 = math.sqrt(2.0 / math.pi)
        return 0.5 * x * (1.0 + jnp.tanh(c0 * (x + 0.044715 * x * x * x)))
    if name == "relu":
        return jnp.maximum(x, 0.0)
    if name == "swish":
        return x * pl.reciprocal(1.0 + jnp.exp(-x), approx=True)
    if name == "tanh":
        return jnp.tanh(x)
    if name == "sigmoid":
        return pl.reciprocal(1.0 + jnp.exp(-x), approx=True)
    raise ValueError(f"unknown activation {name}")


# --------------------------------- the kernel --------------------------------

def _bsarec_fused_kernel(*refs, names, n_heads, alpha, beta, ln_eps,
                         hidden_act, filter_type):
    ins = dict(zip(names, refs))
    o_ref = refs[len(names)]

    l = pl.program_id(1)           # layer index (inner, "arbitrary" axis)
    x_ref = ins["x"]

    # Layer 0: seed the resident output block with the input activations.
    @pl.when(l == 0)
    def _():
        o_ref[...] = x_ref[...]

    h = o_ref[...].astype(jnp.float32)          # (Bb, S, H) carried activation
    Bb, S, H = h.shape
    nh = n_heads
    dh = H // nh
    BN = Bb * nh

    use_fd = filter_type in ("only_fd", "BSARec")
    use_sa = filter_type in ("only_sa", "BSARec")

    # ---------------- FrequencyLayer (filter branch) ----------------
    if use_fd:
        lpA = ins["lpA"][...]                   # (S, R)   low-pass synthesis
        lpB = ins["lpB"][...]                   # (R, S)   low-pass analysis
        R = lpB.shape[0]
        lpB_b = jnp.broadcast_to(lpB[None], (Bb, R, S))
        lpA_b = jnp.broadcast_to(lpA[None], (Bb, S, R))
        tmp = jnp.einsum("brs,bsh->brh", lpB_b, h,
                         preferred_element_type=jnp.float32)
        low = jnp.einsum("bsr,brh->bsh", lpA_b, tmp,
                         preferred_element_type=jnp.float32)
        high = h - low
        seq_fft = low + (beta * beta) * high
        # FrequencyLayer.LayerNorm hard-codes eps=1e-12 in the reference.
        dsp = _layer_norm(seq_fft + h, ins["ln1g"][0], ins["ln1b"][0], 1e-12)

    # ---------------- MultiHeadAttention (self-attention branch) ----------------
    if use_sa:
        mask = ins["mask"][...]                 # (1, S, S) or (Bb, S, S)
        hb = h.astype(jnp.bfloat16)
        # replicate activations over heads -> collapsed leading batch (Bb*nh)
        h_rep = jnp.broadcast_to(hb[:, None], (Bb, nh, S, H)).reshape(BN, S, H)

        def proj(w_ref, b_ref):
            w = w_ref[0]                        # (nh, H, dh) bf16
            w_rep = jnp.broadcast_to(w[None], (Bb, nh, H, dh)).reshape(BN, H, dh)
            y = jnp.einsum("bsh,bhd->bsd", h_rep, w_rep,
                           preferred_element_type=jnp.float32)
            b = b_ref[0]                        # (nh, 1, dh) f32
            y = y.reshape(Bb, nh, S, dh) + b[None]
            return y.reshape(BN, S, dh)

        q = proj(ins["wq"], ins["bq"])
        k = proj(ins["wk"], ins["bk"])
        v = proj(ins["wv"], ins["bv"])

        scale = 1.0 / math.sqrt(dh)
        scores = jnp.einsum("bqd,bkd->bqk",
                            q.astype(jnp.bfloat16), k.astype(jnp.bfloat16),
                            preferred_element_type=jnp.float32) * scale
        scores = scores.reshape(Bb, nh, S, S) + mask[:, None]
        scores = scores - jnp.max(scores, axis=-1, keepdims=True)
        p = jnp.exp(scores)
        p = p * pl.reciprocal(jnp.sum(p, axis=-1, keepdims=True), approx=True)
        p = p.reshape(BN, S, S)

        ctx = jnp.einsum("bqk,bkd->bqd",
                         p.astype(jnp.bfloat16), v.astype(jnp.bfloat16),
                         preferred_element_type=jnp.float32)       # (BN, S, dh)

        wd = ins["wd"][0]                       # (nh, dh, H) bf16
        wd_rep = jnp.broadcast_to(wd[None], (Bb, nh, dh, H)).reshape(BN, dh, H)
        attn = jnp.einsum("bsd,bdj->bsj",
                          ctx.astype(jnp.bfloat16), wd_rep,
                          preferred_element_type=jnp.float32)      # (BN, S, H)
        attn = attn.reshape(Bb, nh, S, H).sum(axis=1) + ins["bd"][0]
        gsp = _layer_norm(attn + h, ins["ln2g"][0], ins["ln2b"][0], ln_eps)

    if filter_type == "only_fd":
        mixed = dsp
    elif filter_type == "only_sa":
        mixed = gsp
    else:  # "BSARec"
        mixed = alpha * dsp + (1.0 - alpha) * gsp

    # ---------------- FeedForward ----------------
    w1 = ins["w1"][0]                           # (H, I) bf16
    w2 = ins["w2"][0]                           # (I, H) bf16
    I = w1.shape[1]
    w1_b = jnp.broadcast_to(w1[None], (Bb, H, I))
    w2_b = jnp.broadcast_to(w2[None], (Bb, I, H))
    mb = mixed.astype(jnp.bfloat16)
    ff = jnp.einsum("bsh,bhi->bsi", mb, w1_b,
                    preferred_element_type=jnp.float32) + ins["b1"][0]
    ff = _kernel_activation(ff, hidden_act)
    ff = jnp.einsum("bsi,bih->bsh", ff.astype(jnp.bfloat16), w2_b,
                    preferred_element_type=jnp.float32) + ins["b2"][0]
    out = _layer_norm(ff + mixed, ins["ln3g"][0], ins["ln3b"][0], ln_eps)

    # Store the new carry; only the final layer's value is written back to HBM
    # (the output block index is constant along the layer axis).
    o_ref[...] = out.astype(o_ref.dtype)


# --------------------------------- wrappers ----------------------------------

def _layer_idx(nd):
    return lambda b, l: (l,) + (0,) * (nd - 1)


def _const_idx(nd):
    return lambda b, l: (0,) * nd


def _auto_batch_block(B, S, H):
    """Largest divisor of B (<=8) that keeps >=2 grid steps and a modest slab."""
    best = 1
    for d in range(1, min(B, 8) + 1):
        if B % d:
            continue
        if d * S * H * 4 > (4 << 20):
            continue
        if B // d >= 2 or B == 1:
            best = d
    return best


def bsarec_encoder_fused(x, attention_mask, packed, *, n_heads, alpha, beta,
                         ln_eps, hidden_act, filter_type, batch_block=None):
    """One pallas_call for the whole encoder stack (grid = (B//Bb, n_layers))."""
    if filter_type not in ("only_fd", "only_sa", "BSARec"):
        raise ValueError(f"unknown filter_type {filter_type}")

    B, S, H = x.shape
    L = packed["ln3g"].shape[0]
    I_dim = packed["w1"].shape[-1]
    Bb = batch_block or _auto_batch_block(B, S, H)
    assert B % Bb == 0, "batch_block must divide the batch size"

    names, args, specs = [], [], []
    est_bytes = 0

    def add(name, arr, block_shape, index_map):
        nonlocal est_bytes
        names.append(name)
        args.append(arr)
        specs.append(pl.BlockSpec(block_shape, index_map))
        est_bytes += 2 * math.prod(block_shape) * arr.dtype.itemsize

    add("x", x, (Bb, S, H), lambda b, l: (b, 0, 0))

    use_fd = filter_type in ("only_fd", "BSARec")
    use_sa = filter_type in ("only_sa", "BSARec")

    if use_sa:
        if attention_mask.shape[0] == 1:
            # shared mask: constant index_map -> fetched once, stays resident.
            add("mask", attention_mask, (1, S, S), lambda b, l: (0, 0, 0))
        else:
            add("mask", attention_mask, (Bb, S, S), lambda b, l: (b, 0, 0))

    if use_fd:
        for nm in ("lpA", "lpB"):
            p = packed[nm]
            add(nm, p, p.shape, _const_idx(p.ndim))
        for nm in ("ln1g", "ln1b"):
            p = packed[nm]
            add(nm, p, (1,) + p.shape[1:], _layer_idx(p.ndim))
    if use_sa:
        for nm in ("wq", "bq", "wk", "bk", "wv", "bv", "wd", "bd", "ln2g", "ln2b"):
            p = packed[nm]
            add(nm, p, (1,) + p.shape[1:], _layer_idx(p.ndim))
    for nm in ("w1", "b1", "w2", "b2", "ln3g", "ln3b"):
        p = packed[nm]
        add(nm, p, (1,) + p.shape[1:], _layer_idx(p.ndim))

    kernel = functools.partial(
        _bsarec_fused_kernel, names=tuple(names),
        n_heads=n_heads, alpha=alpha, beta=beta, ln_eps=ln_eps,
        hidden_act=hidden_act, filter_type=filter_type,
    )

    # VMEM budget: double-buffered blocks + output + generous intermediate margin.
    est_bytes += 2 * Bb * S * H * 4
    est_bytes += 8 * Bb * n_heads * S * S * 4 + 16 * Bb * S * max(H, I_dim) * 4
    vmem_limit = int(min(max(4 * est_bytes, 16 << 20), 40 << 20))

    return pl.pallas_call(
        kernel,
        out_shape=jax.ShapeDtypeStruct((B, S, H), x.dtype),
        grid_spec=pltpu.PrefetchScalarGridSpec(
            num_scalar_prefetch=0,
            grid=(B // Bb, L),
            in_specs=specs,
            out_specs=pl.BlockSpec((Bb, S, H), lambda b, l: (b, 0, 0)),
        ),
        compiler_params=pltpu.CompilerParams(
            dimension_semantics=("parallel", "arbitrary"),
            vmem_limit_bytes=vmem_limit,
        ),
    )(*args)


def bsarec_encoder(hidden_states, attention_mask, packed, *, n_heads, alpha,
                   beta, ln_eps, hidden_act, filter_type,
                   output_all_encoded_layers=False, batch_block=None):
    """Mirrors BSARecEncoder.forward: returns a list of encoded layers."""
    L = packed["ln3g"].shape[0]
    common = dict(n_heads=n_heads, alpha=alpha, beta=beta, ln_eps=ln_eps,
                  hidden_act=hidden_act, filter_type=filter_type,
                  batch_block=batch_block)
    all_layers = [hidden_states]
    if output_all_encoded_layers:
        x = hidden_states
        for l in range(L):
            layer_packed = {k: (v if k in ("lpA", "lpB") else v[l:l + 1])
                            for k, v in packed.items()}
            x = bsarec_encoder_fused(x, attention_mask, layer_packed, **common)
            all_layers.append(x)
        return all_layers
    out = bsarec_encoder_fused(hidden_states, attention_mask, packed, **common)
    all_layers.append(out)
    return all_layers


# ----------------------- parameter construction / packing --------------------

def make_lowpass_factors(seq_len, c):
    """Low-rank factorization of (rfft -> zero bins >= c//2+1 -> irfft, ortho).

    Returns lpA (S, R), lpB (R, S) with low = lpA @ (lpB @ x) along the seq axis.
    R = 2*(c//2+1) padded up to a multiple of 8.
    """
    n_bins = seq_len // 2 + 1
    c_keep = min(c // 2 + 1, n_bins)
    eye = jnp.eye(seq_len, dtype=jnp.float32)
    F = jnp.fft.rfft(eye, axis=0, norm="ortho")[:c_keep]     # F @ x = rfft(x)[:c_keep]
    idx = jnp.arange(c_keep)
    spec_r = jnp.zeros((n_bins, c_keep), jnp.complex64).at[idx, idx].set(1.0)
    spec_i = jnp.zeros((n_bins, c_keep), jnp.complex64).at[idx, idx].set(1j)
    Gr = jnp.fft.irfft(spec_r, n=seq_len, axis=0, norm="ortho")   # (S, c_keep)
    Gi = jnp.fft.irfft(spec_i, n=seq_len, axis=0, norm="ortho")   # (S, c_keep)
    lpB = jnp.concatenate([jnp.real(F), jnp.imag(F)], axis=0)     # (2k, S)
    lpA = jnp.concatenate([Gr, Gi], axis=1)                       # (S, 2k)
    R = lpB.shape[0]
    Rp = ((R + 7) // 8) * 8
    if Rp > R:
        lpB = jnp.concatenate([lpB, jnp.zeros((Rp - R, seq_len), jnp.float32)], 0)
        lpA = jnp.concatenate([lpA, jnp.zeros((seq_len, Rp - R), jnp.float32)], 1)
    return lpA.astype(jnp.float32), lpB.astype(jnp.float32)


def init_block_params(key, hidden_size, intermediate_size):
    """Canonical f32 block weights (torch layout: y = x @ W + b)."""
    H, I = hidden_size, intermediate_size
    ks = jax.random.split(key, 12)
    std = 0.05

    def lin(k, i, o):
        return std * jax.random.normal(k, (i, o), jnp.float32)

    def vec(k, n):
        return std * jax.random.normal(k, (n,), jnp.float32)

    return {
        "wq": lin(ks[0], H, H), "bq": vec(ks[1], H),
        "wk": lin(ks[2], H, H), "bk": vec(ks[3], H),
        "wv": lin(ks[4], H, H), "bv": vec(ks[5], H),
        "wd": lin(ks[6], H, H), "bd": vec(ks[7], H),
        "w1": lin(ks[8], H, I), "b1": vec(ks[9], I),
        "w2": lin(ks[10], I, H), "b2": vec(ks[11], H),
        "ln1g": jnp.ones((H,), jnp.float32), "ln1b": jnp.zeros((H,), jnp.float32),
        "ln2g": jnp.ones((H,), jnp.float32), "ln2b": jnp.zeros((H,), jnp.float32),
        "ln3g": jnp.ones((H,), jnp.float32), "ln3b": jnp.zeros((H,), jnp.float32),
    }


def pack_encoder_params(block, n_layers, n_heads, seq_len, c):
    """Stack one block's params L times (deepcopy semantics), split per head,
    cast matmul weights to bf16, and build the low-pass factors."""
    H = block["wq"].shape[0]
    I = block["w1"].shape[1]
    assert H % n_heads == 0
    dh = H // n_heads

    def stack(a):
        return jnp.broadcast_to(a[None], (n_layers,) + a.shape)

    def head_w(w):   # (H, H) -> (nh, H, dh) bf16
        return jnp.transpose(w.reshape(H, n_heads, dh), (1, 0, 2)).astype(jnp.bfloat16)

    def head_b(b):   # (H,) -> (nh, 1, dh) f32
        return b.reshape(n_heads, dh)[:, None, :]

    def head_wd(w):  # (H, H) -> (nh, dh, H) bf16
        return w.reshape(n_heads, dh, H).astype(jnp.bfloat16)

    lpA, lpB = make_lowpass_factors(seq_len, c)
    return {
        "lpA": lpA, "lpB": lpB,
        "wq": stack(head_w(block["wq"])), "bq": stack(head_b(block["bq"])),
        "wk": stack(head_w(block["wk"])), "bk": stack(head_b(block["bk"])),
        "wv": stack(head_w(block["wv"])), "bv": stack(head_b(block["bv"])),
        "wd": stack(head_wd(block["wd"])), "bd": stack(block["bd"].reshape(1, H)),
        "w1": stack(block["w1"].astype(jnp.bfloat16)), "b1": stack(block["b1"].reshape(1, I)),
        "w2": stack(block["w2"].astype(jnp.bfloat16)), "b2": stack(block["b2"].reshape(1, H)),
        "ln1g": stack(block["ln1g"].reshape(1, H)), "ln1b": stack(block["ln1b"].reshape(1, H)),
        "ln2g": stack(block["ln2g"].reshape(1, H)), "ln2b": stack(block["ln2b"].reshape(1, H)),
        "ln3g": stack(block["ln3g"].reshape(1, H)), "ln3b": stack(block["ln3b"].reshape(1, H)),
    }


# ----------------------------- pure-JAX reference -----------------------------

def _ref_activation(x, name):
    if name == "gelu":
        return 0.5 * x * (1.0 + jax.lax.erf(x / math.sqrt(2.0)))
    if name == "relu":
        return jax.nn.relu(x)
    if name == "swish":
        return jax.nn.silu(x)
    if name == "tanh":
        return jnp.tanh(x)
    if name == "sigmoid":
        return jax.nn.sigmoid(x)
    raise ValueError(name)


def bsarec_encoder_ref(x, mask, block, *, n_layers, n_heads, alpha, beta, c,
                       ln_eps, hidden_act, filter_type):
    B, S, H = x.shape
    dh = H // n_heads
    c_keep = c // 2 + 1
    for _ in range(n_layers):
        if filter_type in ("only_fd", "BSARec"):
            xf = jnp.fft.rfft(x, axis=1, norm="ortho")
            xf = xf.at[:, c_keep:, :].set(0)
            low = jnp.fft.irfft(xf, n=S, axis=1, norm="ortho")
            high = x - low
            dsp = _layer_norm(low + beta * beta * high + x,
                              block["ln1g"], block["ln1b"], 1e-12)
        if filter_type in ("only_sa", "BSARec"):
            q = x @ block["wq"] + block["bq"]
            k = x @ block["wk"] + block["bk"]
            v = x @ block["wv"] + block["bv"]

            def split(t):
                return t.reshape(B, S, n_heads, dh).transpose(0, 2, 1, 3)

            qh, kh, vh = split(q), split(k), split(v)
            sc = jnp.einsum("bnqd,bnkd->bnqk", qh, kh) / math.sqrt(dh)
            sc = sc + mask[:, None, :, :]
            p = jax.nn.softmax(sc, axis=-1)
            ctx = jnp.einsum("bnqk,bnkd->bnqd", p, vh)
            ctx = ctx.transpose(0, 2, 1, 3).reshape(B, S, H)
            attn = ctx @ block["wd"] + block["bd"]
            gsp = _layer_norm(attn + x, block["ln2g"], block["ln2b"], ln_eps)
        if filter_type == "only_fd":
            mixed = dsp
        elif filter_type == "only_sa":
            mixed = gsp
        else:
            mixed = alpha * dsp + (1.0 - alpha) * gsp
        ff = _ref_activation(mixed @ block["w1"] + block["b1"], hidden_act)
        ff = ff @ block["w2"] + block["b2"]
        x = _layer_norm(ff + mixed, block["ln3g"], block["ln3b"], ln_eps)
    return x


# ----------------------------------- demo ------------------------------------

if __name__ == "__main__":
    # Small but representative BSARec configuration.
    B, S, H = 2, 8, 32
    n_layers, n_heads = 2, 2
    intermediate_size = 64
    c = 5                      # low-pass cutoff: c//2 + 1 = 3 kept frequency bins
    alpha, beta = 0.7, 0.7     # beta > 0 branch of FrequencyLayer.__init__
    ln_eps = 1e-12
    hidden_act = "gelu"
    filter_type = "BSARec"

    key = jax.random.PRNGKey(0)
    k_x, k_p = jax.random.split(key)

    hidden_states = jax.random.normal(k_x, (B, S, H), jnp.float32)

    # Causal additive attention mask shared across the batch: (1, S, S),
    # 0 = attend, -10000 = masked (recbole's extended mask, head dim squeezed).
    causal = jnp.tril(jnp.ones((S, S), jnp.float32))
    attention_mask = ((1.0 - causal) * -10000.0)[None]

    block = init_block_params(k_p, H, intermediate_size)
    packed = pack_encoder_params(block, n_layers, n_heads, S, c)

    outputs = bsarec_encoder(
        hidden_states, attention_mask, packed,
        n_heads=n_heads, alpha=alpha, beta=beta, ln_eps=ln_eps,
        hidden_act=hidden_act, filter_type=filter_type,
        output_all_encoded_layers=False,
    )
    final = jax.block_until_ready(outputs[-1])

    ref = bsarec_encoder_ref(
        hidden_states, attention_mask, block,
        n_layers=n_layers, n_heads=n_heads, alpha=alpha, beta=beta, c=c,
        ln_eps=ln_eps, hidden_act=hidden_act, filter_type=filter_type,
    )

    assert final.shape == (B, S, H)
    assert bool(jnp.all(jnp.isfinite(final)))
    # bf16 matmuls + tanh-GELU + approx reciprocal => tolerance-based check.
    max_err = float(jnp.max(jnp.abs(final - ref)))
    assert max_err < 0.1, f"mismatch vs f32 reference: {max_err}"
    print("KERNEL_OK")
</pallas_src>

<mosaic_0001>
module attributes {stable_mosaic.version = 11 : i64} {
  func.func @_bsarec_fused_kernel(%arg0: i32, %arg1: i32, %arg2: memref<1x8x32xf32, #tpu.memory_space<vmem>>, %arg3: memref<1x8x8xf32, #tpu.memory_space<vmem>>, %arg4: memref<8x8xf32, #tpu.memory_space<vmem>>, %arg5: memref<8x8xf32, #tpu.memory_space<vmem>>, %arg6: memref<1x1x32xf32, #tpu.memory_space<vmem>>, %arg7: memref<1x1x32xf32, #tpu.memory_space<vmem>>, %arg8: memref<1x2x32x16xbf16, #tpu.memory_space<vmem>>, %arg9: memref<1x2x1x16xf32, #tpu.memory_space<vmem>>, %arg10: memref<1x2x32x16xbf16, #tpu.memory_space<vmem>>, %arg11: memref<1x2x1x16xf32, #tpu.memory_space<vmem>>, %arg12: memref<1x2x32x16xbf16, #tpu.memory_space<vmem>>, %arg13: memref<1x2x1x16xf32, #tpu.memory_space<vmem>>, %arg14: memref<1x2x16x32xbf16, #tpu.memory_space<vmem>>, %arg15: memref<1x1x32xf32, #tpu.memory_space<vmem>>, %arg16: memref<1x1x32xf32, #tpu.memory_space<vmem>>, %arg17: memref<1x1x32xf32, #tpu.memory_space<vmem>>, %arg18: memref<1x32x64xbf16, #tpu.memory_space<vmem>>, %arg19: memref<1x1x64xf32, #tpu.memory_space<vmem>>, %arg20: memref<1x64x32xbf16, #tpu.memory_space<vmem>>, %arg21: memref<1x1x32xf32, #tpu.memory_space<vmem>>, %arg22: memref<1x1x32xf32, #tpu.memory_space<vmem>>, %arg23: memref<1x1x32xf32, #tpu.memory_space<vmem>>, %arg24: memref<1x8x32xf32, #tpu.memory_space<vmem>>) attributes {dimension_semantics = [#tpu.dimension_semantics<parallel>, #tpu.dimension_semantics<arbitrary>], iteration_bounds = array<i64: 2, 2>, scalar_prefetch = 0 : i64, scratch_operands = 0 : i64, tpu.core_type = #tpu.core_type<tc>, window_params = [{transform_indices = @transform_0, window_bounds = array<i64: 1, 8, 32>}, {pipeline_mode = #tpu.pipeline_mode<synchronous>, transform_indices = @transform_1, window_bounds = array<i64: 1, 8, 8>}, {pipeline_mode = #tpu.pipeline_mode<synchronous>, transform_indices = @transform_2, window_bounds = array<i64: 8, 8>}, {pipeline_mode = #tpu.pipeline_mode<synchronous>, transform_indices = @transform_3, window_bounds = array<i64: 8, 8>}, {transform_indices = @transform_4, window_bounds = array<i64: 1, 1, 32>}, {transform_indices = @transform_5, window_bounds = array<i64: 1, 1, 32>}, {transform_indices = @transform_6, window_bounds = array<i64: 1, 2, 32, 16>}, {transform_indices = @transform_7, window_bounds = array<i64: 1, 2, 1, 16>}, {transform_indices = @transform_8, window_bounds = array<i64: 1, 2, 32, 16>}, {transform_indices = @transform_9, window_bounds = array<i64: 1, 2, 1, 16>}, {transform_indices = @transform_10, window_bounds = array<i64: 1, 2, 32, 16>}, {transform_indices = @transform_11, window_bounds = array<i64: 1, 2, 1, 16>}, {transform_indices = @transform_12, window_bounds = array<i64: 1, 2, 16, 32>}, {transform_indices = @transform_13, window_bounds = array<i64: 1, 1, 32>}, {transform_indices = @transform_14, window_bounds = array<i64: 1, 1, 32>}, {transform_indices = @transform_15, window_bounds = array<i64: 1, 1, 32>}, {transform_indices = @transform_16, window_bounds = array<i64: 1, 32, 64>}, {transform_indices = @transform_17, window_bounds = array<i64: 1, 1, 64>}, {transform_indices = @transform_18, window_bounds = array<i64: 1, 64, 32>}, {transform_indices = @transform_19, window_bounds = array<i64: 1, 1, 32>}, {transform_indices = @transform_20, window_bounds = array<i64: 1, 1, 32>}, {transform_indices = @transform_21, window_bounds = array<i64: 1, 1, 32>}, {transform_indices = @transform_22, window_bounds = array<i64: 1, 8, 32>}]} {
    %c0_i32 = arith.constant 0 : i32
    %0 = arith.cmpi eq, %arg1, %c0_i32 : i32
    %1 = arith.extui %0 : i1 to i32
    %c0_i32_0 = arith.constant 0 : i32
    %2 = arith.cmpi ne, %1, %c0_i32_0 : i32
    scf.if %2 {
      %c0_109 = arith.constant 0 : index
      %c0_110 = arith.constant 0 : index
      %c0_111 = arith.constant 0 : index
      %212 = vector.load %arg2[%c0_109, %c0_110, %c0_111] : memref<1x8x32xf32, #tpu.memory_space<vmem>>, vector<1x8x32xf32>
      %c0_112 = arith.constant 0 : index
      %c0_113 = arith.constant 0 : index
      %c0_114 = arith.constant 0 : index
      %213 = vector.load %arg24[%c0_112, %c0_113, %c0_114] : memref<1x8x32xf32, #tpu.memory_space<vmem>>, vector<1x8x32xf32>
      tpu.vector_store %arg24[%c0_112, %c0_113, %c0_114], %212 {strides = array<i32>} : memref<1x8x32xf32, #tpu.memory_space<vmem>>, vector<1x8x32xf32>,
    } else {
    }
    %c0 = arith.constant 0 : index
    %c0_1 = arith.constant 0 : index
    %c0_2 = arith.constant 0 : index
    %3 = vector.load %arg24[%c0, %c0_1, %c0_2] : memref<1x8x32xf32, #tpu.memory_space<vmem>>, vector<1x8x32xf32>
    %c0_3 = arith.constant 0 : index
    %c0_4 = arith.constant 0 : index
    %4 = vector.load %arg4[%c0_3, %c0_4] : memref<8x8xf32, #tpu.memory_space<vmem>>, vector<8x8xf32>
    %c0_5 = arith.constant 0 : index
    %c0_6 = arith.constant 0 : index
    %5 = vector.load %arg5[%c0_5, %c0_6] : memref<8x8xf32, #tpu.memory_space<vmem>>, vector<8x8xf32>
    %6 = vector.shape_cast %5 : vector<8x8xf32> to vector<1x8x8xf32>
    %7 = vector.shape_cast %4 : vector<8x8xf32> to vector<1x8x8xf32>
    "tpu.trace_start"() <{level = 10 : i32, message = "brs,bsh->brh"}> : () -> ()
    %cst = arith.constant dense<0.000000e+00> : vector<1x8x32xf32>
    %8 = tpu.matmul %6, %3, %cst {dimension_numbers = #tpu.dot_dimension_numbers<[2], [1], [1], [2], [0, 0, 0, 1, 1, 2], [0], [0]>} : vector<1x8x8xf32>, vector<1x8x32xf32>, vector<1x8x32xf32> -> vector<1x8x32xf32>
    "tpu.trace_stop"() : () -> ()
    "tpu.trace_start"() <{level = 10 : i32, message = "bsr,brh->bsh"}> : () -> ()
    %cst_7 = arith.constant dense<0.000000e+00> : vector<1x8x32xf32>
    %9 = tpu.matmul %7, %8, %cst_7 {dimension_numbers = #tpu.dot_dimension_numbers<[2], [1], [1], [2], [0, 0, 0, 1, 1, 2], [0], [0]>} : vector<1x8x8xf32>, vector<1x8x32xf32>, vector<1x8x32xf32> -> vector<1x8x32xf32>
    "tpu.trace_stop"() : () -> ()
    %10 = arith.subf %3, %9 : vector<1x8x32xf32>
    %cst_8 = arith.constant 4.900000e-01 : f32
    %11 = vector.broadcast %cst_8 : f32 to vector<1x8x32xf32>
    %12 = arith.mulf %11, %10 : vector<1x8x32xf32>
    %13 = arith.addf %9, %12 : vector<1x8x32xf32>
    %14 = arith.addf %13, %3 : vector<1x8x32xf32>
    %c0_9 = arith.constant 0 : index
    %c0_10 = arith.constant 0 : index
    %c0_11 = arith.constant 0 : index
    %15 = vector.load %arg6[%c0_9, %c0_10, %c0_11] : memref<1x1x32xf32, #tpu.memory_space<vmem>>, vector<1x1x32xf32>
    %16 = vector.shape_cast %15 : vector<1x1x32xf32> to vector<1x32xf32>
    %c0_12 = arith.constant 0 : index
    %c0_13 = arith.constant 0 : index
    %c0_14 = arith.constant 0 : index
    %17 = vector.load %arg7[%c0_12, %c0_13, %c0_14] : memref<1x1x32xf32, #tpu.memory_space<vmem>>, vector<1x1x32xf32>
    %18 = vector.shape_cast %17 : vector<1x1x32xf32> to vector<1x32xf32>
    %cst_15 = arith.constant dense<0.000000e+00> : vector<1x8xf32>
    %19 = vector.multi_reduction <add>, %14, %cst_15 [2] : vector<1x8x32xf32> to vector<1x8xf32>
    %20 = vector.shape_cast %19 : vector<1x8xf32> to vector<1x8x1xf32>
    %cst_16 = arith.constant 3.200000e+01 : f32
    %21 = vector.broadcast %cst_16 : f32 to vector<1x8x1xf32>
    %22 = arith.divf %20, %21 : vector<1x8x1xf32>
    %23 = vector.broadcast %22 : vector<1x8x1xf32> to vector<1x8x32xf32>
    %24 = arith.subf %14, %23 : vector<1x8x32xf32>
    %25 = arith.mulf %24, %24 : vector<1x8x32xf32>
    %cst_17 = arith.constant dense<0.000000e+00> : vector<1x8xf32>
    %26 = vector.multi_reduction <add>, %25, %cst_17 [2] : vector<1x8x32xf32> to vector<1x8xf32>
    %27 = vector.shape_cast %26 : vector<1x8xf32> to vector<1x8x1xf32>
    %cst_18 = arith.constant 3.200000e+01 : f32
    %28 = vector.broadcast %cst_18 : f32 to vector<1x8x1xf32>
    %29 = arith.divf %27, %28 : vector<1x8x1xf32>
    %cst_19 = arith.constant 9.99999996E-13 : f32
    %30 = vector.broadcast %cst_19 : f32 to vector<1x8x1xf32>
    %31 = arith.addf %29, %30 : vector<1x8x1xf32>
    %32 = math.rsqrt %31 : vector<1x8x1xf32>
    %33 = vector.broadcast %32 : vector<1x8x1xf32> to vector<1x8x32xf32>
    %34 = arith.mulf %24, %33 : vector<1x8x32xf32>
    %35 = vector.shape_cast %16 : vector<1x32xf32> to vector<1x1x32xf32>
    %36 = vector.broadcast %35 : vector<1x1x32xf32> to vector<1x8x32xf32>
    %37 = arith.mulf %34, %36 : vector<1x8x32xf32>
    %38 = vector.shape_cast %18 : vector<1x32xf32> to vector<1x1x32xf32>
    %39 = vector.broadcast %38 : vector<1x1x32xf32> to vector<1x8x32xf32>
    %40 = arith.addf %37, %39 : vector<1x8x32xf32>
    %c0_20 = arith.constant 0 : index
    %c0_21 = arith.constant 0 : index
    %c0_22 = arith.constant 0 : index
    %41 = vector.load %arg3[%c0_20, %c0_21, %c0_22] : memref<1x8x8xf32, #tpu.memory_space<vmem>>, vector<1x8x8xf32>
    %42 = arith.truncf %3 : vector<1x8x32xf32> to vector<1x8x32xbf16>
    %43 = vector.shape_cast %42 : vector<1x8x32xbf16> to vector<1x1x8x32xbf16>
    %44 = vector.shape_cast %43 : vector<1x1x8x32xbf16> to vector<1x1x8x32xbf16>
    %45 = vector.broadcast %44 : vector<1x1x8x32xbf16> to vector<1x2x8x32xbf16>
    %46 = vector.shape_cast %45 : vector<1x2x8x32xbf16> to vector<2x8x32xbf16>
    %c0_23 = arith.constant 0 : index
    %c0_24 = arith.constant 0 : index
    %c0_25 = arith.constant 0 : index
    %c0_26 = arith.constant 0 : index
    %47 = vector.load %arg8[%c0_23, %c0_24, %c0_25, %c0_26] : memref<1x2x32x16xbf16, #tpu.memory_space<vmem>>, vector<1x2x32x16xbf16>
    %48 = vector.shape_cast %47 : vector<1x2x32x16xbf16> to vector<2x32x16xbf16>
    %49 = vector.shape_cast %48 : vector<2x32x16xbf16> to vector<1x2x32x16xbf16>
    %50 = vector.shape_cast %49 : vector<1x2x32x16xbf16> to vector<2x32x16xbf16>
    "tpu.trace_start"() <{level = 10 : i32, message = "bsh,bhd->bsd"}> : () -> ()
    %cst_27 = arith.constant dense<0.000000e+00> : vector<2x8x16xf32>
    %51 = tpu.matmul %46, %50, %cst_27 {dimension_numbers = #tpu.dot_dimension_numbers<[2], [1], [1], [2], [0, 0, 0, 1, 1, 2], [0], [0]>} : vector<2x8x32xbf16>, vector<2x32x16xbf16>, vector<2x8x16xf32> -> vector<2x8x16xf32>
    "tpu.trace_stop"() : () -> ()
    %c0_28 = arith.constant 0 : index
    %c0_29 = arith.constant 0 : index
    %c0_30 = arith.constant 0 : index
    %c0_31 = arith.constant 0 : index
    %52 = vector.load %arg9[%c0_28, %c0_29, %c0_30, %c0_31] : memref<1x2x1x16xf32, #tpu.memory_space<vmem>>, vector<1x2x1x16xf32>
    %53 = vector.shape_cast %52 : vector<1x2x1x16xf32> to vector<2x1x16xf32>
    %54 = vector.shape_cast %51 : vector<2x8x16xf32> to vector<1x2x8x16xf32>
    %55 = vector.shape_cast %53 : vector<2x1x16xf32> to vector<1x2x1x16xf32>
    %56 = vector.broadcast %55 : vector<1x2x1x16xf32> to vector<1x2x8x16xf32>
    %57 = arith.addf %54, %56 : vector<1x2x8x16xf32>
    %58 = vector.shape_cast %57 : vector<1x2x8x16xf32> to vector<2x8x16xf32>
    %c0_32 = arith.constant 0 : index
    %c0_33 = arith.constant 0 : index
    %c0_34 = arith.constant 0 : index
    %c0_35 = arith.constant 0 : index
    %59 = vector.load %arg10[%c0_32, %c0_33, %c0_34, %c0_35] : memref<1x2x32x16xbf16, #tpu.memory_space<vmem>>, vector<1x2x32x16xbf16>
    %60 = vector.shape_cast %59 : vector<1x2x32x16xbf16> to vector<2x32x16xbf16>
    %61 = vector.shape_cast %60 : vector<2x32x16xbf16> to vector<1x2x32x16xbf16>
    %62 = vector.shape_cast %61 : vector<1x2x32x16xbf16> to vector<2x32x16xbf16>
    "tpu.trace_start"() <{level = 10 : i32, message = "bsh,bhd->bsd"}> : () -> ()
    %cst_36 = arith.constant dense<0.000000e+00> : vector<2x8x16xf32>
    %63 = tpu.matmul %46, %62, %cst_36 {dimension_numbers = #tpu.dot_dimension_numbers<[2], [1], [1], [2], [0, 0, 0, 1, 1, 2], [0], [0]>} : vector<2x8x32xbf16>, vector<2x32x16xbf16>, vector<2x8x16xf32> -> vector<2x8x16xf32>
    "tpu.trace_stop"() : () -> ()
    %c0_37 = arith.constant 0 : index
    %c0_38 = arith.constant 0 : index
    %c0_39 = arith.constant 0 : index
    %c0_40 = arith.constant 0 : index
    %64 = vector.load %arg11[%c0_37, %c0_38, %c0_39, %c0_40] : memref<1x2x1x16xf32, #tpu.memory_space<vmem>>, vector<1x2x1x16xf32>
    %65 = vector.shape_cast %64 : vector<1x2x1x16xf32> to vector<2x1x16xf32>
    %66 = vector.shape_cast %63 : vector<2x8x16xf32> to vector<1x2x8x16xf32>
    %67 = vector.shape_cast %65 : vector<2x1x16xf32> to vector<1x2x1x16xf32>
    %68 = vector.broadcast %67 : vector<1x2x1x16xf32> to vector<1x2x8x16xf32>
    %69 = arith.addf %66, %68 : vector<1x2x8x16xf32>
    %70 = vector.shape_cast %69 : vector<1x2x8x16xf32> to vector<2x8x16xf32>
    %c0_41 = arith.constant 0 : index
    %c0_42 = arith.constant 0 : index
    %c0_43 = arith.constant 0 : index
    %c0_44 = arith.constant 0 : index
    %71 = vector.load %arg12[%c0_41, %c0_42, %c0_43, %c0_44] : memref<1x2x32x16xbf16, #tpu.memory_space<vmem>>, vector<1x2x32x16xbf16>
    %72 = vector.shape_cast %71 : vector<1x2x32x16xbf16> to vector<2x32x16xbf16>
    %73 = vector.shape_cast %72 : vector<2x32x16xbf16> to vector<1x2x32x16xbf16>
    %74 = vector.shape_cast %73 : vector<1x2x32x16xbf16> to vector<2x32x16xbf16>
    "tpu.trace_start"() <{level = 10 : i32, message = "bsh,bhd->bsd"}> : () -> ()
    %cst_45 = arith.constant dense<0.000000e+00> : vector<2x8x16xf32>
    %75 = tpu.matmul %46, %74, %cst_45 {dimension_numbers = #tpu.dot_dimension_numbers<[2], [1], [1], [2], [0, 0, 0, 1, 1, 2], [0], [0]>} : vector<2x8x32xbf16>, vector<2x32x16xbf16>, vector<2x8x16xf32> -> vector<2x8x16xf32>
    "tpu.trace_stop"() : () -> ()
    %c0_46 = arith.constant 0 : index
    %c0_47 = arith.constant 0 : index
    %c0_48 = arith.constant 0 : index
    %c0_49 = arith.constant 0 : index
    %76 = vector.load %arg13[%c0_46, %c0_47, %c0_48, %c0_49] : memref<1x2x1x16xf32, #tpu.memory_space<vmem>>, vector<1x2x1x16xf32>
    %77 = vector.shape_cast %76 : vector<1x2x1x16xf32> to vector<2x1x16xf32>
    %78 = vector.shape_cast %75 : vector<2x8x16xf32> to vector<1x2x8x16xf32>
    %79 = vector.shape_cast %77 : vector<2x1x16xf32> to vector<1x2x1x16xf32>
    %80 = vector.broadcast %79 : vector<1x2x1x16xf32> to vector<1x2x8x16xf32>
    %81 = arith.addf %78, %80 : vector<1x2x8x16xf32>
    %82 = vector.shape_cast %81 : vector<1x2x8x16xf32> to vector<2x8x16xf32>
    %83 = arith.truncf %58 : vector<2x8x16xf32> to vector<2x8x16xbf16>
    %84 = arith.truncf %70 : vector<2x8x16xf32> to vector<2x8x16xbf16>
    "tpu.trace_start"() <{level = 10 : i32, message = "bqd,bkd->bqk"}> : () -> ()
    %cst_50 = arith.constant dense<0.000000e+00> : vector<2x8x8xf32>
    %85 = tpu.matmul %83, %84, %cst_50 {dimension_numbers = #tpu.dot_dimension_numbers<[2], [2], [1], [1], [0, 0, 0, 1, 1, 1], [0], [0]>} : vector<2x8x16xbf16>, vector<2x8x16xbf16>, vector<2x8x8xf32> -> vector<2x8x8xf32>
    "tpu.trace_stop"() : () -> ()
    %cst_51 = arith.constant 2.500000e-01 : f32
    %86 = vector.broadcast %cst_51 : f32 to vector<2x8x8xf32>
    %87 = arith.mulf %85, %86 : vector<2x8x8xf32>
    %88 = vector.shape_cast %87 : vector<2x8x8xf32> to vector<1x2x8x8xf32>
    %89 = vector.shape_cast %41 : vector<1x8x8xf32> to vector<1x1x8x8xf32>
    %90 = vector.broadcast %89 : vector<1x1x8x8xf32> to vector<1x2x8x8xf32>
    %91 = arith.addf %88, %90 : vector<1x2x8x8xf32>
    %cst_52 = arith.constant dense<0xFF800000> : vector<1x2x8xf32>
    %92 = vector.multi_reduction <maximumf>, %91, %cst_52 [3] : vector<1x2x8x8xf32> to vector<1x2x8xf32>
    %93 = vector.shape_cast %92 : vector<1x2x8xf32> to vector<1x2x8x1xf32>
    %94 = vector.broadcast %93 : vector<1x2x8x1xf32> to vector<1x2x8x8xf32>
    %95 = arith.subf %91, %94 : vector<1x2x8x8xf32>
    %96 = math.exp %95 : vector<1x2x8x8xf32>
    %cst_53 = arith.constant dense<0.000000e+00> : vector<1x2x8xf32>
    %97 = vector.multi_reduction <add>, %96, %cst_53 [3] : vector<1x2x8x8xf32> to vector<1x2x8xf32>
    %98 = vector.shape_cast %97 : vector<1x2x8xf32> to vector<1x2x8x1xf32>
    %99 = tpu.reciprocal %98 {approx = true} : vector<1x2x8x1xf32> -> vector<1x2x8x1xf32>
    %100 = vector.broadcast %99 : vector<1x2x8x1xf32> to vector<1x2x8x8xf32>
    %101 = arith.mulf %96, %100 : vector<1x2x8x8xf32>
    %102 = vector.shape_cast %101 : vector<1x2x8x8xf32> to vector<2x8x8xf32>
    %103 = arith.truncf %102 : vector<2x8x8xf32> to vector<2x8x8xbf16>
    %104 = arith.truncf %82 : vector<2x8x16xf32> to vector<2x8x16xbf16>
    "tpu.trace_start"() <{level = 10 : i32, message = "bqk,bkd->bqd"}> : () -> ()
    %cst_54 = arith.constant dense<0.000000e+00> : vector<2x8x16xf32>
    %105 = tpu.matmul %103, %104, %cst_54 {dimension_numbers = #tpu.dot_dimension_numbers<[2], [1], [1], [2], [0, 0, 0, 1, 1, 2], [0], [0]>} : vector<2x8x8xbf16>, vector<2x8x16xbf16>, vector<2x8x16xf32> -> vector<2x8x16xf32>
    "tpu.trace_stop"() : () -> ()
    %c0_55 = arith.constant 0 : index
    %c0_56 = arith.constant 0 : index
    %c0_57 = arith.constant 0 : index
    %c0_58 = arith.constant 0 : index
    %106 = vector.load %arg14[%c0_55, %c0_56, %c0_57, %c0_58] : memref<1x2x16x32xbf16, #tpu.memory_space<vmem>>, vector<1x2x16x32xbf16>
    %107 = vector.shape_cast %106 : vector<1x2x16x32xbf16> to vector<2x16x32xbf16>
    %108 = vector.shape_cast %107 : vector<2x16x32xbf16> to vector<1x2x16x32xbf16>
    %109 = vector.shape_cast %108 : vector<1x2x16x32xbf16> to vector<2x16x32xbf16>
    %110 = arith.truncf %105 : vector<2x8x16xf32> to vector<2x8x16xbf16>
    "tpu.trace_start"() <{level = 10 : i32, message = "bsd,bdj->bsj"}> : () -> ()
    %cst_59 = arith.constant dense<0.000000e+00> : vector<2x8x32xf32>
    %111 = tpu.matmul %110, %109, %cst_59 {dimension_numbers = #tpu.dot_dimension_numbers<[2], [1], [1], [2], [0, 0, 0, 1, 1, 2], [0], [0]>} : vector<2x8x16xbf16>, vector<2x16x32xbf16>, vector<2x8x32xf32> -> vector<2x8x32xf32>
    "tpu.trace_stop"() : () -> ()
    %112 = vector.shape_cast %111 : vector<2x8x32xf32> to vector<1x2x8x32xf32>
    %cst_60 = arith.constant dense<0.000000e+00> : vector<1x8x32xf32>
    %113 = vector.multi_reduction <add>, %112, %cst_60 [1] : vector<1x2x8x32xf32> to vector<1x8x32xf32>
    %c0_61 = arith.constant 0 : index
    %c0_62 = arith.constant 0 : index
    %c0_63 = arith.constant 0 : index
    %114 = vector.load %arg15[%c0_61, %c0_62, %c0_63] : memref<1x1x32xf32, #tpu.memory_space<vmem>>, vector<1x1x32xf32>
    %115 = vector.shape_cast %114 : vector<1x1x32xf32> to vector<1x32xf32>
    %116 = vector.shape_cast %115 : vector<1x32xf32> to vector<1x1x32xf32>
    %117 = vector.broadcast %116 : vector<1x1x32xf32> to vector<1x8x32xf32>
    %118 = arith.addf %113, %117 : vector<1x8x32xf32>
    %119 = arith.addf %118, %3 : vector<1x8x32xf32>
    %c0_64 = arith.constant 0 : index
    %c0_65 = arith.constant 0 : index
    %c0_66 = arith.constant 0 : index
    %120 = vector.load %arg16[%c0_64, %c0_65, %c0_66] : memref<1x1x32xf32, #tpu.memory_space<vmem>>, vector<1x1x32xf32>
    %121 = vector.shape_cast %120 : vector<1x1x32xf32> to vector<1x32xf32>
    %c0_67 = arith.constant 0 : index
    %c0_68 = arith.constant 0 : index
    %c0_69 = arith.constant 0 : index
    %122 = vector.load %arg17[%c0_67, %c0_68, %c0_69] : memref<1x1x32xf32, #tpu.memory_space<vmem>>, vector<1x1x32xf32>
    %123 = vector.shape_cast %122 : vector<1x1x32xf32> to vector<1x32xf32>
    %cst_70 = arith.constant dense<0.000000e+00> : vector<1x8xf32>
    %124 = vector.multi_reduction <add>, %119, %cst_70 [2] : vector<1x8x32xf32> to vector<1x8xf32>
    %125 = vector.shape_cast %124 : vector<1x8xf32> to vector<1x8x1xf32>
    %cst_71 = arith.constant 3.200000e+01 : f32
    %126 = vector.broadcast %cst_71 : f32 to vector<1x8x1xf32>
    %127 = arith.divf %125, %126 : vector<1x8x1xf32>
    %128 = vector.broadcast %127 : vector<1x8x1xf32> to vector<1x8x32xf32>
    %129 = arith.subf %119, %128 : vector<1x8x32xf32>
    %130 = arith.mulf %129, %129 : vector<1x8x32xf32>
    %cst_72 = arith.constant dense<0.000000e+00> : vector<1x8xf32>
    %131 = vector.multi_reduction <add>, %130, %cst_72 [2] : vector<1x8x32xf32> to vector<1x8xf32>
    %132 = vector.shape_cast %131 : vector<1x8xf32> to vector<1x8x1xf32>
    %cst_73 = arith.constant 3.200000e+01 : f32
    %133 = vector.broadcast %cst_73 : f32 to vector<1x8x1xf32>
    %134 = arith.divf %132, %133 : vector<1x8x1xf32>
    %cst_74 = arith.constant 9.99999996E-13 : f32
    %135 = vector.broadcast %cst_74 : f32 to vector<1x8x1xf32>
    %136 = arith.addf %134, %135 : vector<1x8x1xf32>
    %137 = math.rsqrt %136 : vector<1x8x1xf32>
    %138 = vector.broadcast %137 : vector<1x8x1xf32> to vector<1x8x32xf32>
    %139 = arith.mulf %129, %138 : vector<1x8x32xf32>
    %140 = vector.shape_cast %121 : vector<1x32xf32> to vector<1x1x32xf32>
    %141 = vector.broadcast %140 : vector<1x1x32xf32> to vector<1x8x32xf32>
    %142 = arith.mulf %139, %141 : vector<1x8x32xf32>
    %143 = vector.shape_cast %123 : vector<1x32xf32> to vector<1x1x32xf32>
    %144 = vector.broadcast %143 : vector<1x1x32xf32> to vector<1x8x32xf32>
    %145 = arith.addf %142, %144 : vector<1x8x32xf32>
    %cst_75 = arith.constant 0.699999988 : f32
    %146 = vector.broadcast %cst_75 : f32 to vector<1x8x32xf32>
    %147 = arith.mulf %146, %40 : vector<1x8x32xf32>
    %cst_76 = arith.constant 3.000000e-01 : f32
    %148 = vector.broadcast %cst_76 : f32 to vector<1x8x32xf32>
    %149 = arith.mulf %148, %145 : vector<1x8x32xf32>
    %150 = arith.addf %147, %149 : vector<1x8x32xf32>
    %c0_77 = arith.constant 0 : index
    %c0_78 = arith.constant 0 : index
    %c0_79 = arith.constant 0 : index
    %151 = vector.load %arg18[%c0_77, %c0_78, %c0_79] : memref<1x32x64xbf16, #tpu.memory_space<vmem>>, vector<1x32x64xbf16>
    %152 = vector.shape_cast %151 : vector<1x32x64xbf16> to vector<32x64xbf16>
    %c0_80 = arith.constant 0 : index
    %c0_81 = arith.constant 0 : index
    %c0_82 = arith.constant 0 : index
    %153 = vector.load %arg20[%c0_80, %c0_81, %c0_82] : memref<1x64x32xbf16, #tpu.memory_space<vmem>>, vector<1x64x32xbf16>
    %154 = vector.shape_cast %153 : vector<1x64x32xbf16> to vector<64x32xbf16>
    %155 = vector.shape_cast %152 : vector<32x64xbf16> to vector<1x32x64xbf16>
    %156 = vector.shape_cast %154 : vector<64x32xbf16> to vector<1x64x32xbf16>
    %157 = arith.truncf %150 : vector<1x8x32xf32> to vector<1x8x32xbf16>
    "tpu.trace_start"() <{level = 10 : i32, message = "bsh,bhi->bsi"}> : () -> ()
    %cst_83 = arith.constant dense<0.000000e+00> : vector<1x8x64xf32>
    %158 = tpu.matmul %157, %155, %cst_83 {dimension_numbers = #tpu.dot_dimension_numbers<[2], [1], [1], [2], [0, 0, 0, 1, 1, 2], [0], [0]>} : vector<1x8x32xbf16>, vector<1x32x64xbf16>, vector<1x8x64xf32> -> vector<1x8x64xf32>
    "tpu.trace_stop"() : () -> ()
    %c0_84 = arith.constant 0 : index
    %c0_85 = arith.constant 0 : index
    %c0_86 = arith.constant 0 : index
    %159 = vector.load %arg19[%c0_84, %c0_85, %c0_86] : memref<1x1x64xf32, #tpu.memory_space<vmem>>, vector<1x1x64xf32>
    %160 = vector.shape_cast %159 : vector<1x1x64xf32> to vector<1x64xf32>
    %161 = vector.shape_cast %160 : vector<1x64xf32> to vector<1x1x64xf32>
    %162 = vector.broadcast %161 : vector<1x1x64xf32> to vector<1x8x64xf32>
    %163 = arith.addf %158, %162 : vector<1x8x64xf32>
    %cst_87 = arith.constant 5.000000e-01 : f32
    %164 = vector.broadcast %cst_87 : f32 to vector<1x8x64xf32>
    %165 = arith.mulf %164, %163 : vector<1x8x64xf32>
    %cst_88 = arith.constant 4.471500e-02 : f32
    %166 = vector.broadcast %cst_88 : f32 to vector<1x8x64xf32>
    %167 = arith.mulf %166, %163 : vector<1x8x64xf32>
    %168 = arith.mulf %167, %163 : vector<1x8x64xf32>
    %169 = arith.mulf %168, %163 : vector<1x8x64xf32>
    %170 = arith.addf %163, %169 : vector<1x8x64xf32>
    %cst_89 = arith.constant 0.797884583 : f32
    %171 = vector.broadcast %cst_89 : f32 to vector<1x8x64xf32>
    %172 = arith.mulf %171, %170 : vector<1x8x64xf32>
    %173 = math.tanh %172 : vector<1x8x64xf32>
    %cst_90 = arith.constant 1.000000e+00 : f32
    %174 = vector.broadcast %cst_90 : f32 to vector<1x8x64xf32>
    %175 = arith.addf %174, %173 : vector<1x8x64xf32>
    %176 = arith.mulf %165, %175 : vector<1x8x64xf32>
    %177 = arith.truncf %176 : vector<1x8x64xf32> to vector<1x8x64xbf16>
    "tpu.trace_start"() <{level = 10 : i32, message = "bsi,bih->bsh"}> : () -> ()
    %cst_91 = arith.constant dense<0.000000e+00> : vector<1x8x32xf32>
    %178 = tpu.matmul %177, %156, %cst_91 {dimension_numbers = #tpu.dot_dimension_numbers<[2], [1], [1], [2], [0, 0, 0, 1, 1, 2], [0], [0]>} : vector<1x8x64xbf16>, vector<1x64x32xbf16>, vector<1x8x32xf32> -> vector<1x8x32xf32>
    "tpu.trace_stop"() : () -> ()
    %c0_92 = arith.constant 0 : index
    %c0_93 = arith.constant 0 : index
    %c0_94 = arith.constant 0 : index
    %179 = vector.load %arg21[%c0_92, %c0_93, %c0_94] : memref<1x1x32xf32, #tpu.memory_space<vmem>>, vector<1x1x32xf32>
    %180 = vector.shape_cast %179 : vector<1x1x32xf32> to vector<1x32xf32>
    %181 = vector.shape_cast %180 : vector<1x32xf32> to vector<1x1x32xf32>
    %182 = vector.broadcast %181 : vector<1x1x32xf32> to vector<1x8x32xf32>
    %183 = arith.addf %178, %182 : vector<1x8x32xf32>
    %184 = arith.addf %183, %150 : vector<1x8x32xf32>
    %c0_95 = arith.constant 0 : index
    %c0_96 = arith.constant 0 : index
    %c0_97 = arith.constant 0 : index
    %185 = vector.load %arg22[%c0_95, %c0_96, %c0_97] : memref<1x1x32xf32, #tpu.memory_space<vmem>>, vector<1x1x32xf32>
    %186 = vector.shape_cast %185 : vector<1x1x32xf32> to vector<1x32xf32>
    %c0_98 = arith.constant 0 : index
    %c0_99 = arith.constant 0 : index
    %c0_100 = arith.constant 0 : index
    %187 = vector.load %arg23[%c0_98, %c0_99, %c0_100] : memref<1x1x32xf32, #tpu.memory_space<vmem>>, vector<1x1x32xf32>
    %188 = vector.shape_cast %187 : vector<1x1x32xf32> to vector<1x32xf32>
    %cst_101 = arith.constant dense<0.000000e+00> : vector<1x8xf32>
    %189 = vector.multi_reduction <add>, %184, %cst_101 [2] : vector<1x8x32xf32> to vector<1x8xf32>
    %190 = vector.shape_cast %189 : vector<1x8xf32> to vector<1x8x1xf32>
    %cst_102 = arith.constant 3.200000e+01 : f32
    %191 = vector.broadcast %cst_102 : f32 to vector<1x8x1xf32>
    %192 = arith.divf %190, %191 : vector<1x8x1xf32>
    %193 = vector.broadcast %192 : vector<1x8x1xf32> to vector<1x8x32xf32>
    %194 = arith.subf %184, %193 : vector<1x8x32xf32>
    %195 = arith.mulf %194, %194 : vector<1x8x32xf32>
    %cst_103 = arith.constant dense<0.000000e+00> : vector<1x8xf32>
    %196 = vector.multi_reduction <add>, %195, %cst_103 [2] : vector<1x8x32xf32> to vector<1x8xf32>
    %197 = vector.shape_cast %196 : vector<1x8xf32> to vector<1x8x1xf32>
    %cst_104 = arith.constant 3.200000e+01 : f32
    %198 = vector.broadcast %cst_104 : f32 to vector<1x8x1xf32>
    %199 = arith.divf %197, %198 : vector<1x8x1xf32>
    %cst_105 = arith.constant 9.99999996E-13 : f32
    %200 = vector.broadcast %cst_105 : f32 to vector<1x8x1xf32>
    %201 = arith.addf %199, %200 : vector<1x8x1xf32>
    %202 = math.rsqrt %201 : vector<1x8x1xf32>
    %203 = vector.broadcast %202 : vector<1x8x1xf32> to vector<1x8x32xf32>
    %204 = arith.mulf %194, %203 : vector<1x8x32xf32>
    %205 = vector.shape_cast %186 : vector<1x32xf32> to vector<1x1x32xf32>
    %206 = vector.broadcast %205 : vector<1x1x32xf32> to vector<1x8x32xf32>
    %207 = arith.mulf %204, %206 : vector<1x8x32xf32>
    %208 = vector.shape_cast %188 : vector<1x32xf32> to vector<1x1x32xf32>
    %209 = vector.broadcast %208 : vector<1x1x32xf32> to vector<1x8x32xf32>
    %210 = arith.addf %207, %209 : vector<1x8x32xf32>
    %c0_106 = arith.constant 0 : index
    %c0_107 = arith.constant 0 : index
    %c0_108 = arith.constant 0 : index
    %211 = vector.load %arg24[%c0_106, %c0_107, %c0_108] : memref<1x8x32xf32, #tpu.memory_space<vmem>>, vector<1x8x32xf32>
    tpu.vector_store %arg24[%c0_106, %c0_107, %c0_108], %210 {strides = array<i32>} : memref<1x8x32xf32, #tpu.memory_space<vmem>>, vector<1x8x32xf32>,
    return
  }
  func.func @transform_0(%arg0: i32, %arg1: i32) -> (i32, i32, i32) {
    %c0_i32 = arith.constant 0 : i32
    %c0_i32_0 = arith.constant 0 : i32
    %c0_i32_1 = arith.constant 0 : i32
    return %arg0, %c0_i32, %c0_i32_0 : i32, i32, i32
  }
  func.func @transform_1(%arg0: i32, %arg1: i32) -> (i32, i32, i32) {
    %c0_i32 = arith.constant 0 : i32
    %c0_i32_0 = arith.constant 0 : i32
    %c0_i32_1 = arith.constant 0 : i32
    %c0_i32_2 = arith.constant 0 : i32
    return %c0_i32, %c0_i32_0, %c0_i32_1 : i32, i32, i32
  }
  func.func @transform_2(%arg0: i32, %arg1: i32) -> (i32, i32) {
    %c0_i32 = arith.constant 0 : i32
    %c0_i32_0 = arith.constant 0 : i32
    %c0_i32_1 = arith.constant 0 : i32
    return %c0_i32, %c0_i32_0 : i32, i32
  }
  func.func @transform_3(%arg0: i32, %arg1: i32) -> (i32, i32) {
    %c0_i32 = arith.constant 0 : i32
    %c0_i32_0 = arith.constant 0 : i32
    %c0_i32_1 = arith.constant 0 : i32
    return %c0_i32, %c0_i32_0 : i32, i32
  }
  func.func @transform_4(%arg0: i32, %arg1: i32) -> (i32, i32, i32) {
    %c0_i32 = arith.constant 0 : i32
    %c0_i32_0 = arith.constant 0 : i32
    %c0_i32_1 = arith.constant 0 : i32
    return %arg1, %c0_i32, %c0_i32_0 : i32, i32, i32
  }
  func.func @transform_5(%arg0: i32, %arg1: i32) -> (i32, i32, i32) {
    %c0_i32 = arith.constant 0 : i32
    %c0_i32_0 = arith.constant 0 : i32
    %c0_i32_1 = arith.constant 0 : i32
    return %arg1, %c0_i32, %c0_i32_0 : i32, i32, i32
  }
  func.func @transform_6(%arg0: i32, %arg1: i32) -> (i32, i32, i32, i32) {
    %c0_i32 = arith.constant 0 : i32
    %c0_i32_0 = arith.constant 0 : i32
    %c0_i32_1 = arith.constant 0 : i32
    %c0_i32_2 = arith.constant 0 : i32
    return %arg1, %c0_i32, %c0_i32_0, %c0_i32_1 : i32, i32, i32, i32
  }
  func.func @transform_7(%arg0: i32, %arg1: i32) -> (i32, i32, i32, i32) {
    %c0_i32 = arith.constant 0 : i32
    %c0_i32_0 = arith.constant 0 : i32
    %c0_i32_1 = arith.constant 0 : i32
    %c0_i32_2 = arith.constant 0 : i32
    return %arg1, %c0_i32, %c0_i32_0, %c0_i32_1 : i32, i32, i32, i32
  }
  func.func @transform_8(%arg0: i32, %arg1: i32) -> (i32, i32, i32, i32) {
    %c0_i32 = arith.constant 0 : i32
    %c0_i32_0 = arith.constant 0 : i32
    %c0_i32_1 = arith.constant 0 : i32
    %c0_i32_2 = arith.constant 0 : i32
    return %arg1, %c0_i32, %c0_i32_0, %c0_i32_1 : i32, i32, i32, i32
  }
  func.func @transform_9(%arg0: i32, %arg1: i32) -> (i32, i32, i32, i32) {
    %c0_i32 = arith.constant 0 : i32
    %c0_i32_0 = arith.constant 0 : i32
    %c0_i32_1 = arith.constant 0 : i32
    %c0_i32_2 = arith.constant 0 : i32
    return %arg1, %c0_i32, %c0_i32_0, %c0_i32_1 : i32, i32, i32, i32
  }
  func.func @transform_10(%arg0: i32, %arg1: i32) -> (i32, i32, i32, i32) {
    %c0_i32 = arith.constant 0 : i32
    %c0_i32_0 = arith.constant 0 : i32
    %c0_i32_1 = arith.constant 0 : i32
    %c0_i32_2 = arith.constant 0 : i32
    return %arg1, %c0_i32, %c0_i32_0, %c0_i32_1 : i32, i32, i32, i32
  }
  func.func @transform_11(%arg0: i32, %arg1: i32) -> (i32, i32, i32, i32) {
    %c0_i32 = arith.constant 0 : i32
    %c0_i32_0 = arith.constant 0 : i32
    %c0_i32_1 = arith.constant 0 : i32
    %c0_i32_2 = arith.constant 0 : i32
    return %arg1, %c0_i32, %c0_i32_0, %c0_i32_1 : i32, i32, i32, i32
  }
  func.func @transform_12(%arg0: i32, %arg1: i32) -> (i32, i32, i32, i32) {
    %c0_i32 = arith.constant 0 : i32
    %c0_i32_0 = arith.constant 0 : i32
    %c0_i32_1 = arith.constant 0 : i32
    %c0_i32_2 = arith.constant 0 : i32
    return %arg1, %c0_i32, %c0_i32_0, %c0_i32_1 : i32, i32, i32, i32
  }
  func.func @transform_13(%arg0: i32, %arg1: i32) -> (i32, i32, i32) {
    %c0_i32 = arith.constant 0 : i32
    %c0_i32_0 = arith.constant 0 : i32
    %c0_i32_1 = arith.constant 0 : i32
    return %arg1, %c0_i32, %c0_i32_0 : i32, i32, i32
  }
  func.func @transform_14(%arg0: i32, %arg1: i32) -> (i32, i32, i32) {
    %c0_i32 = arith.constant 0 : i32
    %c0_i32_0 = arith.constant 0 : i32
    %c0_i32_1 = arith.constant 0 : i32
    return %arg1, %c0_i32, %c0_i32_0 : i32, i32, i32
  }
  func.func @transform_15(%arg0: i32, %arg1: i32) -> (i32, i32, i32) {
    %c0_i32 = arith.constant 0 : i32
    %c0_i32_0 = arith.constant 0 : i32
    %c0_i32_1 = arith.constant 0 : i32
    return %arg1, %c0_i32, %c0_i32_0 : i32, i32, i32
  }
  func.func @transform_16(%arg0: i32, %arg1: i32) -> (i32, i32, i32) {
    %c0_i32 = arith.constant 0 : i32
    %c0_i32_0 = arith.constant 0 : i32
    %c0_i32_1 = arith.constant 0 : i32
    return %arg1, %c0_i32, %c0_i32_0 : i32, i32, i32
  }
  func.func @transform_17(%arg0: i32, %arg1: i32) -> (i32, i32, i32) {
    %c0_i32 = arith.constant 0 : i32
    %c0_i32_0 = arith.constant 0 : i32
    %c0_i32_1 = arith.constant 0 : i32
    return %arg1, %c0_i32, %c0_i32_0 : i32, i32, i32
  }
  func.func @transform_18(%arg0: i32, %arg1: i32) -> (i32, i32, i32) {
    %c0_i32 = arith.constant 0 : i32
    %c0_i32_0 = arith.constant 0 : i32
    %c0_i32_1 = arith.constant 0 : i32
    return %arg1, %c0_i32, %c0_i32_0 : i32, i32, i32
  }
  func.func @transform_19(%arg0: i32, %arg1: i32) -> (i32, i32, i32) {
    %c0_i32 = arith.constant 0 : i32
    %c0_i32_0 = arith.constant 0 : i32
    %c0_i32_1 = arith.constant 0 : i32
    return %arg1, %c0_i32, %c0_i32_0 : i32, i32, i32
  }
  func.func @transform_20(%arg0: i32, %arg1: i32) -> (i32, i32, i32) {
    %c0_i32 = arith.constant 0 : i32
    %c0_i32_0 = arith.constant 0 : i32
    %c0_i32_1 = arith.constant 0 : i32
    return %arg1, %c0_i32, %c0_i32_0 : i32, i32, i32
  }
  func.func @transform_21(%arg0: i32, %arg1: i32) -> (i32, i32, i32) {
    %c0_i32 = arith.constant 0 : i32
    %c0_i32_0 = arith.constant 0 : i32
    %c0_i32_1 = arith.constant 0 : i32
    return %arg1, %c0_i32, %c0_i32_0 : i32, i32, i32
  }
  func.func @transform_22(%arg0: i32, %arg1: i32) -> (i32, i32, i32) {
    %c0_i32 = arith.constant 0 : i32
    %c0_i32_0 = arith.constant 0 : i32
    %c0_i32_1 = arith.constant 0 : i32
    return %arg0, %c0_i32, %c0_i32_0 : i32, i32, i32
  }
}

</mosaic_0001>

<bundles_post_ra>
// kernel: tpu_custom_call.1
= control target key start
LH: loop header
LB: loop body
LE: loop exit
PB: predicated region body
PF: predicated region fallthrough
CT: control target
= control target key end

     0   :  { %s3387_s0 = inlined_call_operand.vmem [shape: f32[2,8,32], index: 0, kind: input, shape index: {}]   ;;  %s3388_s1 = inlined_call_operand.vmem [shape: f32[1,8,8], index: 1, kind: input, shape index: {}]   ;;  %s3389_s2 = inlined_call_operand.vmem [shape: f32[8,8], index: 2, kind: input, shape index: {}]   ;;  %s3390_s3 = inlined_call_operand.vmem [shape: f32[8,8], index: 3, kind: input, shape index: {}]   ;;  %s3391_s4 = inlined_call_operand.vmem [shape: f32[2,1,32], index: 4, kind: input, shape index: {}]   ;;  %s3392_s5 = inlined_call_operand.vmem [shape: f32[2,1,32], index: 5, kind: input, shape index: {}]   ;;  %s3393_s6 = inlined_call_operand.vmem [shape: bf16[2,2,32,16], index: 6, kind: input, shape index: {}]   ;;  %s3394_s7 = inlined_call_operand.vmem [shape: f32[2,2,1,16], index: 7, kind: input, shape index: {}]   ;;  %s3395_s8 = inlined_call_operand.vmem [shape: bf16[2,2,32,16], index: 8, kind: input, shape index: {}]   ;;  %s3396_s9 = inlined_call_operand.vmem [shape: f32[2,2,1,16], index: 9, kind: input, shape index: {}]   ;;  %s3397_s10 = inlined_call_operand.vmem [shape: bf16[2,2,32,16], index: 10, kind: input, shape index: {}]   ;;  %s3398_s11 = inlined_call_operand.vmem [shape: f32[2,2,1,16], index: 11, kind: input, shape index: {}]   ;;  %s3399_s12 = inlined_call_operand.vmem [shape: bf16[2,2,16,32], index: 12, kind: input, shape index: {}]   ;;  %s3400_s13 = inlined_call_operand.vmem [shape: f32[2,1,32], index: 13, kind: input, shape index: {}]   ;;  %s3401_s14 = inlined_call_operand.vmem [shape: f32[2,1,32], index: 14, kind: input, shape index: {}]   ;;  %s3402_s15 = inlined_call_operand.vmem [shape: f32[2,1,32], index: 15, kind: input, shape index: {}]   ;;  %s3403_s16 = inlined_call_operand.vmem [shape: bf16[2,32,64], index: 16, kind: input, shape index: {}]   ;;  %s3404_s17 = inlined_call_operand.vmem [shape: f32[2,1,64], index: 17, kind: input, shape index: {}]   ;;  %s3405_s18 = inlined_call_operand.vmem [shape: bf16[2,64,32], index: 18, kind: input, shape index: {}]   ;;  %s3406_s19 = inlined_call_operand.vmem [shape: f32[2,1,32], index: 19, kind: input, shape index: {}]   ;;  %s3407_s20 = inlined_call_operand.vmem [shape: f32[2,1,32], index: 20, kind: input, shape index: {}]   ;;  %s3408_s21 = inlined_call_operand.vmem [shape: f32[2,1,32], index: 21, kind: input, shape index: {}]   ;;  %s3409_s22 = inlined_call_operand.hbm [shape: f32[2,8,32], index: 22, kind: output, shape index: {}]  }
   0x1   :  { %3428 = sst [smem:[#allocation21_spill]] %s3387_s0 }
   0x2   :  { %3429 = sst [smem:[#allocation22_spill]] %s3388_s1 }
   0x3   :  { %3430 = sst [smem:[#allocation23_spill]] %s3389_s2 }
   0x4   :  { %3431 = sst [smem:[#allocation24_spill]] %s3390_s3 }
   0x5   :  { %3432 = sst [smem:[#allocation25_spill]] %s3391_s4 }
   0x6   :  { %3433 = sst [smem:[#allocation26_spill]] %s3392_s5 }
   0x7   :  { %3434 = sst [smem:[#allocation27_spill]] %s3393_s6 }
   0x8   :  { %3435 = sst [smem:[#allocation28_spill]] %s3394_s7 }
   0x9   :  { %3436 = sst [smem:[#allocation29_spill]] %s3395_s8 }
   0xa   :  { %3437 = sst [smem:[#allocation30_spill]] %s3396_s9 }
   0xb   :  { %3438 = sst [smem:[#allocation31_spill]] %s3397_s10 }
   0xc   :  { %3439 = sst [smem:[#allocation32_spill]] %s3398_s11 }
   0xd   :  { %3440 = sst [smem:[#allocation33_spill]] %s3399_s12 }
   0xe   :  { %3441 = sst [smem:[#allocation34_spill]] %s3401_s14 }
   0xf   :  { %3442 = sst [smem:[#allocation35_spill]] %s3402_s15 }
  0x10   :  { %3443 = sst [smem:[#allocation36_spill]] %s3403_s16 }
  0x11   :  { %3444 = sst [smem:[#allocation37_spill]] %s3405_s18 }
  0x12   :  { %3445 = sst [smem:[#allocation38_spill]] %s3406_s19 }
  0x13   :  { %3446 = sst [smem:[#allocation39_spill]] %s3407_s20 }
  0x14   :  { %3447 = sst [smem:[#allocation40_spill]] %s3408_s21 }
  0x15   :  { %3448 = sst [smem:[#allocation41_spill]] %s3409_s22 }
  0x16   :  { %27 = vsyncpa [#allocation3], 0 }
  0x17   :  { %29 = vsyncpa [#allocation3 + $0x1], 0  ;;  %s2965_s3 = smov 0   ;;  %s2967_s28 = smov 0  }
  0x18   :  { %s2969_s29 = smov 0   ;;  %s2971_s30 = smov 0  }
  0x19   :  { %s2973_s4 = smov 0   ;;  %s2975_s0 = smov 0  }
  0x1a   :  { %s2977_s23 = smov 0   ;;  %s2979_s1 = smov 0  }
  0x1b LB: > { %3449 = sst [smem:[#allocation5_spill]] %s2817_s3  ;;  %s2402_s5 = sadd.s32 4294967295, %s2845_s1   ;;  %s2845_s1 = sphi %s2979_s1, %s35_s1   ;;  %s2841_s23 = sphi %s2977_s23, %s3517_s23   ;;  %s2837_s0 = sphi %s2975_s0, %s3516_s0   ;;  %s2833_s4 = sphi %s2973_s4, %s3515_s4   ;;  %s2829_s30 = sphi %s2971_s30, %s3514_s30   ;;  %s2825_s29 = sphi %s2969_s29, %s3513_s29   ;;  %s2821_s28 = sphi %s2967_s28, %s3512_s28   ;;  %s2817_s3 = sphi %s2965_s3, %s3511_s3  }
  0x1c   : > { %3450 = sst [smem:[#allocation6_spill]] %s2821_s28  ;;  %s2403_s24 = sadd.s32 4294967294, %s2845_s1  }
  0x1d   : > { %3451 = sst [smem:[#allocation7_spill]] %s2825_s29  ;;  %s44_s6 = sadd.s32 1, %s2837_s0 }
  0x1e   : > { %3452 = sst [smem:[#allocation8_spill]] %s2829_s30  ;;  %p45_p0 = scmp.ge.s32.totalorder %s44_s6, 2 }
  0x1f   : > { %3453 = sst [smem:[#allocation9_spill]] %s2833_s4  ;;  %s47_s25 = sadd.s32 1, %s2841_s23 }
  0x20   : > { %3454 = sst [smem:[#allocation10_spill]] %s2837_s0  ;;  %p621_p1 = scmp.ne.s32.totalorder %s2825_s29, %s2821_s28 }
  0x21   : > { %3455 = sst [smem:[#allocation11_spill]] %s2841_s23  ;;  %p622_p2 = scmp.eq.s32.totalorder %s2402_s5, 3 }
  0x22   : > { %3456 = sst [smem:[#allocation12_spill]] %s2845_s1  ;;  %s3519_s6 = smov (%p45_p0, %s44_s6), 0 }
  0x23   : > { %3457 = sst [smem:[#allocation13_spill]] %s3519_s6  ;;  %s3521_s25 = smov (!%p45_p0, %s47_s25), %s2841_s23 }
  0x24   : > { %p3014_p3 = por %p622_p2, %p621_p1  ;;  %p627_p4 = scmp.ne.s32.totalorder %s2821_s28, %s2817_s3 }
  0x25   : > { %p49_p5 = scmp.ge.s32.totalorder %s3521_s25, 2  ;;  %p628_p6 = scmp.eq.s32.totalorder %s2403_s24, 3 }
  0x26   : > { %s3458_s26 = scalar_select %p3014_p3, 1, 0 }
  0x27   : > { %p2406_p7 = scmp.ge.s32.totalorder %s2845_s1, 1  ;;  %p785_p8 = scmp.lt.s32.totalorder %s2845_s1, 5 }
  0x28   : > { %3459 = sst [smem:[#allocation14_spill]] %s3458_s26  ;;  %s3523_s25 = smov (%p49_p5, %s3521_s25), 0 }
  0x29   : > { %3460 = sst [smem:[#allocation15_spill]] %s3523_s25  ;;  %p3024_p9 = por %p628_p6, %p627_p4 }
  0x2a   : > { %p786_p10 = pnand %p2406_p7, %p785_p8  ;;  %s608_s27 = ssub.s32 %s2841_s23, %s3523_s25 }
  0x2b   : > { %s3461_s2 = scalar_select %p3024_p9, 1, 0 }
  0x2c   : > { %s611_s5 = sadd.s32 1, %s2825_s29  ;;  %p609_p11 = scmp.eq.s32.totalorder %s608_s27, 0 }
  0x2d   : > { %3462 = sst [smem:[#allocation16_spill]] %s3461_s2  ;;  %789 = sbr.rel (%p786_p10) target bundleno = 2619 (0xa3b), region = 108 }
  0x2e   : > { %s3032_s6 = scalar_select %p609_p11, %s2825_s29, %s611_s5  }
  0x30   : > { %3463 = sst [smem:[#allocation17_spill]] %s3032_s6 }
  0x34   : > { %s3418_s24 = sand.u32 1, %s2821_s28   ;;  %p915_p12 = scmp.lt.s32.totalorder %s2833_s4, 1 }
  0x35   : > { %s2407_s0 = sshll.u32 %s3418_s24, 3  ;;  %p919_p13 = scmp.lt.s32.totalorder %s2829_s30, 1 }
  0x36   : > { %s916_s3 = scalar_select %p915_p12, %s2833_s4, 1 }
  0x37   : > { %s3041_s2 = scalar_select %p919_p13, %s2829_s30, 1 }
  0x38   : > { %s2408_s27 = sshll.u32 %s916_s3, 3  ;;  %s3464_s23 = sld [smem:[#allocation21_spill]] }
  0x39   : > { %s2480_s21 = sshll.u32 %s3041_s2, 5  ;;  %s3467_s18 = sld [smem:[#allocation27_spill]] }
  0x3a   : > { %s2411_s25 = sshll.u32 %s3041_s2, 1  ;;  %s3468_s7 = sld [smem:[#allocation28_spill]] }
  0x3b   : > { %s3470_s8 = sld [smem:[#allocation29_spill]]  ;;  %s3471_s9 = sld [smem:[#allocation30_spill]] }
  0x3c   : > { %s3472_s10 = sld [smem:[#allocation31_spill]]  ;;  %s3473_s11 = sld [smem:[#allocation32_spill]] }
  0x3d   : > { %s2483_s22 = sshll.u32 %s3041_s2, 4  ;;  %s3474_s12 = sld [smem:[#allocation33_spill]] }
  0x3e   : > { %s918_s6 = scalar_lea.vmem %s3464_s23, %s2408_s27  ;;  %s3478_s16 = sld [smem:[#allocation36_spill]] }
  0x3f   : > { %s3058_s3 = scalar_lea.vmem %s3467_s18, %s2480_s21  ;;  %s3480_s4 = sld [smem:[#allocation37_spill]] }
  0x40   : > { %s3064_s29 = scalar_lea.vmem %s3468_s7, %s2411_s25  ;;  %s3481_s18 = sld [smem:[#allocation38_spill]] }
  0x41   : > { %3469 = sst [smem:[#allocation18_spill]] %s3064_s29  ;;  %s3069_s28 = scalar_lea.vmem %s3470_s8, %s2480_s21 }
  0x42   : > { %s3074_s19 = scalar_lea.vmem %s3471_s9, %s2411_s25  ;;  %s3079_s27 = scalar_lea.vmem %s3472_s10, %s2480_s21 }
  0x43   : > { %s3084_s23 = scalar_lea.vmem %s3473_s11, %s2411_s25  ;;  %s3090_s24 = scalar_lea.vmem %s3474_s12, %s2483_s22 }
  0x44   : > { %3475 = sst [smem:[#allocation19_spill]] %s3090_s24  ;;  %s3107_s11 = scalar_lea.vmem %s3478_s16, %s2483_s22 }
  0x45   : > { %3479 = sst [smem:[#allocation20_spill]] %s3107_s11  ;;  %s973_s12 = scalar_lea.vmem %s3404_s17, %s3041_s2 }
  0x46   : > { %s3116_s26 = scalar_lea.vmem %s3480_s4, %s2480_s21  ;;  %s981_s14 = scalar_lea.vmem %s3481_s18, %s3041_s2 }
  0x47   : > { %s3482_s30 = sld [smem:[#allocation39_spill]]  ;;  %s3483_s5 = sld [smem:[#allocation40_spill]] }
  0x48   : > { %s3130_s11 = scalar_lea.vmem [#allocation2], %s2407_s0  ;;  %s3484_s7 = sld [smem:[#allocation8_spill]] }
  0x4d   : > { %s984_s15 = scalar_lea.vmem %s3482_s30, %s3041_s2  ;;  %s987_s16 = scalar_lea.vmem %s3483_s5, %s3041_s2 }
  0x4e   : > { %p2424_p0 = scmp.ne.s32.totalorder %s3484_s7, 0 }
  0x4f   : > { %v993_v0 = vld [vmem:[%s918_s6] sm:$0xff] (!%p2424_p0)  ;;  %vm994_vm0 = vcmask (!%p2424_p0), 261120  }
  0x50   : > { %992 = sbr.rel (%p2424_p0) target bundleno = 87 (0x57), region = 112  ;;  %995 = vst.msk [vmem:[%s3130_s11] sm:$0xff] (!%p2424_p0), %vm994_vm0, %v993_v0 }
  0x57 PF: > { %v3135_v1 = vld [vmem:[%s3130_s11] sm:$0xff]  ;;  %s3485_s18 = sld [smem:[#allocation24_spill]]  ;;  %vm999_vm1 = vcmask 64512   ;;  %v2715_v3 = vld [vmem:[%s3058_s3 + $0x10] sm:$0xff]   ;;  %v2847_v4 = vmov 0.0   ;;  %vm2848_vm2 = vmmov 0   ;;  %s3490_s4 = scalar_lea.vmem %s3400_s13, %s3041_s2 }
  0x58   : > { %2528 = vmatprep.subr.mxu0 %v2847_v4  ;;  %2530 = vmatprep.mubr.msk.f32.mxu0 %vm2848_vm2, %v2847_v4  ;;  %v2716_v5 = vld [vmem:[%s3058_s3 + $0x18] sm:$0xff]   ;;  %vm1152_vm3 = vcmask 261120   ;;  %v2717_v6 = vld [vmem:[%s3069_s28 + $0x10] sm:$0xff]   ;;  %v3157_v7 = vpack.c.bf16 %v3135_v1, %v3135_v1  ;;  %s3486_s30 = sld [smem:[#allocation23_spill]]  ;;  %v2719_v12 = vld [vmem:[%s3058_s3] sm:$0xff]   ;;  %vm1574_vm4 = vcmask 130048  }
  0x59   : > { %2529 = vmatpush3.msra.mxu0 %v3135_v1  ;;  %2546 = vmatprep.subr.bf16.mxu1 %v2847_v4  ;;  %v2718_v8 = vld [vmem:[%s3069_s28 + $0x18] sm:$0xff]   ;;  %v2723_v9 = vld [vmem:[%s3079_s27 + $0x10] sm:$0xff]   ;;  %v2720_v15 = vld [vmem:[%s3058_s3 + $0x8] sm:$0xff]   ;;  %s3487_s1 = sld [smem:[#allocation18_spill]]  ;;  %vm1700_vm5 = vcmask 1043456   ;;  %s3491_s9 = sld [smem:[#allocation20_spill]] }
  0x5a   : > { %2547 = vmatpush3.bf16.msra.mxu1 %v2715_v3  ;;  %2550 = vmatprep.mubr.msk.bf16.mxu1 %vm2848_vm2, %v2847_v4  ;;  %v2724_v10 = vld [vmem:[%s3079_s27 + $0x18] sm:$0xff]   ;;  %v2721_v16 = vld [vmem:[%s3069_s28] sm:$0xff]   ;;  %v2722_v21 = vld [vmem:[%s3069_s28 + $0x8] sm:$0xff]   ;;  %s3492_s20 = sld [smem:[#allocation25_spill]]  ;;  %s3494_s7 = sld [smem:[#allocation34_spill]]  ;;  %vm2054_vm6 = vcmask 523264  }
  0x5b   : > { %2548 = vmatprep.subr.bf16.mxu1 %v2847_v4  ;;  %2533 = vmatprep.subr.mxu0 %v2847_v4  ;;  %v2444_v23 = vld [vmem:[%s3074_s19 + $0x1] ss:$0 sm:$0xff]  ;;  %v2726_v34 = vld [vmem:[%s3079_s27 + $0x8] sm:$0xff]   ;;  %v2443_v49 = vld [vmem:[%s3074_s19] ss:$0 sm:$0xff]  ;;  %s3488_s19 = sld [smem:[#allocation22_spill]] }
  0x5c   : > { %v2725_v32 = vld [vmem:[%s3079_s27] sm:$0xff]   ;;  %s3489_s27 = sld [smem:[#allocation19_spill]]  ;;  %s3496_s0 = sld [smem:[#allocation26_spill]] }
  0x5d   : > { %v998_v2 = vld [vmem:[%s3485_s18] sm:$0xff]  ;;  %s3498_s3 = sld [smem:[#allocation35_spill]]  ;;  %s3506_s18 = sld [smem:[#allocation41_spill]] }
  0x5e   : > { %2531 = vmatmul.mubr.msk.f32.vlgmr.msra.gmra.mrb[0].mxu0 %vm999_vm1, %v998_v2  ;;  %2549 = vmatpush3.bf16.msra.mxu1 %v2716_v5  ;;  %v997_v11 = vld [vmem:[%s3486_s30] sm:$0xff]  ;;  %s3501_s8 = sld [smem:[#allocation9_spill]] }
  0x5f   : > { %2535 = vmatprep.mubr.msk.f32.mxu0 %vm2848_vm2, %v2847_v4  ;;  %2562 = vmatprep.subr.bf16.mxu1 %v2847_v4  ;;  %v2436_v26 = vld [vmem:[%s3487_s1 + $0x1] ss:$0 sm:$0xff]  ;;  %v2435_v56 = vld [vmem:[%s3487_s1] ss:$0 sm:$0xff] }
  0x60   : > { %v2452_v36 = vld [vmem:[%s3084_s23 + $0x1] ss:$0 sm:$0xff]  ;;  %v2451_v61 = vld [vmem:[%s3084_s23] ss:$0 sm:$0xff]  ;;  %s3493_s25 = scalar_lea.vmem %s3492_s20, %s3041_s2  ;;  %s3495_s21 = scalar_lea.vmem %s3494_s7, %s3041_s2 }
  0x61   : > { %2551 = vmatmul.mubr.msk.bf16.vlgmr.msra.gmra.mrb[0].mxu1 %vm1152_vm3, %v3157_v7  ;;  %s2143_s7 = sshll.u32 %s3130_s11, 4  ;;  %s3332_s7 = int_to_ptr.vmem [resolvable:$true] %s2143_s7 }
  0x62   : > { %2563 = vmatpush3.bf16.msra.mxu1 %v2717_v6  ;;  %2566 = vmatprep.mubr.msk.bf16.mxu1 %vm2848_vm2, %v2847_v4  ;;  %s3497_s6 = scalar_lea.vmem %s3496_s0, %s3041_s2 }
  0x63   : > { %2564 = vmatprep.subr.bf16.mxu1 %v2847_v4  ;;  %s3499_s28 = scalar_lea.vmem %s3498_s3, %s3041_s2  ;;  %s2751_s2 = scalar_lea.vmem %s3332_s7, 128 }
  0x64   : > { %s2477_s5 = sshll.u32 %s3501_s8, 7  ;;  %p2752_p1 = scmp.ne.s32.totalorder %s3332_s7, %s2751_s2 }
  0x65   : > { %s3330_s0 = scalar_lea.hbm %s3506_s18, %s2477_s5 }
  0x66   : > { %2565 = vmatpush3.bf16.msra.mxu1 %v2718_v8  ;;  %p2753_p2 = pnand %p2752_p1, %p3014_p3 }
  0x67   : > { %2578 = vmatprep.subr.bf16.mxu1 %v2847_v4 }
  0x68   : > { %p2754_p4 = pneg %p2753_p2 }
  0x69   : > { %2567 = vmatmul.mubr.msk.bf16.vlgmr.msra.gmra.mrb[4].mxu1 %vm1152_vm3, %v3157_v7 }
  0x6a   : > { %2582 = vmatprep.mubr.msk.bf16.mxu1 %vm2848_vm2, %v2847_v4  ;;  %2579 = vmatpush3.bf16.msra.mxu1 %v2723_v9 }
  0x6b   : > { %2580 = vmatprep.subr.bf16.mxu1 %v2847_v4 }
  0x6e   : > { %2581 = vmatpush3.bf16.msra.mxu1 %v2724_v10 }
  0x6f   : > { %2592 = vmatprep.subr.bf16.mxu1 %v2847_v4 }
  0x71   : > { %2583 = vmatmul.mubr.msk.bf16.vlgmr.msra.gmra.mrb[8].mxu1 %vm1152_vm3, %v3157_v7 }
  0x72   : > { %2594 = vmatprep.mubr.msk.bf16.mxu1 %vm2848_vm2, %v2847_v4 }
 0x131   : > { %v1069_v13 = vpop.f32.mrb[0].mxu0 }
 0x132   : > { %v2532_v14 = vpop.f32.mrb[1].mxu0  ;;  %2534 = vmatpush3.msra.mxu0 %v1069_v13 }
 0x133   : > { %2536 = vmatmul.mubr.msk.f32.vlgmr.msra.gmra.mrb[2].mxu0 %vm999_vm1, %v997_v11  ;;  %2538 = vmatprep.subr.bf16.mxu0 %v2847_v4 }
 0x134   : > { %2539 = vmatpush3.bf16.msra.mxu0 %v2719_v12  ;;  %2542 = vmatprep.mubr.msk.bf16.mxu0 %vm2848_vm2, %v2847_v4  ;;  %v1292_v17 = vpop.f32.mrb[0].mxu1 }
 0x135   : > { %2540 = vmatprep.subr.bf16.mxu0 %v2847_v4  ;;  %v2552_v18 = vpop.f32.mrb[1].mxu1  ;;  %v1313_v30 = vadd.f32 %v2436_v26, %v1292_v17  ;;  %v1181_v17 = vld [vmem:[%s3488_s19] sm:$0xff] }
 0x136   : > { %v1295_v19 = vpop.f32.mrb[2].mxu1 }
 0x137   : > { %v2553_v20 = vpop.f32.mrb[3].mxu1  ;;  %v1571_v33 = vpack.c.bf16 %v1313_v30, %v1313_v30 }
 0x138   : > { %2541 = vmatpush3.bf16.msra.mxu0 %v2720_v15 }
 0x139   : > { %2554 = vmatprep.subr.bf16.mxu0 %v2847_v4 }
 0x13b   : > { %2543 = vmatmul.mubr.msk.bf16.vlgmr.msra.gmra.mrb[4].mxu0 %vm1152_vm3, %v3157_v7 }
 0x13c   : > { %2555 = vmatpush3.bf16.msra.mxu0 %v2721_v16  ;;  %2558 = vmatprep.mubr.msk.bf16.mxu0 %vm2848_vm2, %v2847_v4  ;;  %v1420_v22 = vpop.f32.mrb[4].mxu1 }
 0x13d   : > { %2556 = vmatprep.subr.bf16.mxu0 %v2847_v4  ;;  %v1441_v24 = vadd.f32 %v2444_v23, %v1420_v22  ;;  %v2568_v25 = vpop.f32.mrb[5].mxu1 }
 0x13e   : > { %v1423_v27 = vpop.f32.mrb[6].mxu1 }
 0x13f   : > { %v1573_v28 = vpack.c.bf16 %v1441_v24, %v1441_v24  ;;  %v2569_v29 = vpop.f32.mrb[7].mxu1 }
 0x140   : > { %2557 = vmatpush3.bf16.msra.mxu0 %v2722_v21 }
 0x141   : > { %2570 = vmatprep.subr.bf16.mxu0 %v2847_v4  ;;  %v1625_v31 = vsel %vm1574_vm4, %v1573_v28, 0 }
 0x142   : > { %2593 = vmatpush3.bf16.xpose.msra.mxu1 %v1625_v31 }
 0x143   : > { %2559 = vmatmul.mubr.msk.bf16.vlgmr.msra.gmra.mrb[8].mxu0 %vm1152_vm3, %v3157_v7  ;;  %2604 = vmatprep.subr.bf16.mxu1 %v2847_v4 }
 0x144   : > { %2574 = vmatprep.mubr.msk.bf16.mxu0 %vm2848_vm2, %v2847_v4  ;;  %2571 = vmatpush3.bf16.msra.mxu0 %v2725_v32  ;;  %v1548_v35 = vpop.f32.mrb[8].mxu1 }
 0x145   : > { %2572 = vmatprep.subr.bf16.mxu0 %v2847_v4  ;;  %v1569_v37 = vadd.f32 %v2452_v36, %v1548_v35  ;;  %v2584_v38 = vpop.f32.mrb[9].mxu1 }
 0x146   : > { %v1551_v39 = vpop.f32.mrb[10].mxu1 }
 0x147   : > { %v1696_v40 = vpack.c.bf16 %v1569_v37, %v1569_v37  ;;  %v2585_v41 = vpop.f32.mrb[11].mxu1 }
 0x148   : > { %2573 = vmatpush3.bf16.msra.mxu0 %v2726_v34 }
 0x149   : > { %2595 = vmatmul.mubr.msk.bf16.vlgmr.msra.gmra.mrb[12].mxu1 %vm1574_vm4, %v1571_v33  ;;  %2586 = vmatprep.subr.bf16.mxu0 %v2847_v4  ;;  %v1748_v42 = vsel %vm1700_vm5, %v1696_v40, 0 }
 0x14a   : > { %2606 = vmatprep.mubr.msk.bf16.mxu1 %vm2848_vm2, %v2847_v4  ;;  %2605 = vmatpush3.bf16.msra.mxu1 %v1748_v42 }
 0x14b   : > { %2575 = vmatmul.mubr.msk.bf16.vlgmr.msra.gmra.mrb[12].mxu0 %vm1152_vm3, %v3157_v7  ;;  %2616 = vmatprep.subr.bf16.mxu1 %v2847_v4 }
 0x14c   : > { %2588 = vmatprep.mubr.msk.bf16.mxu0 %vm2848_vm2, %v2847_v4 }
 0x206   : > { %v1142_v43 = vpop.f32.mrb[2].mxu0 }
 0x207   : > { %v2537_v44 = vpop.f32.mrb[3].mxu0  ;;  %v1146_v10 = vsub.f32 %v3135_v1, %v1142_v43 }
 0x209   : > { %v1147_v12 = vmul.f32 0.49, %v1146_v10 }
 0x20b   : > { %v1148_v20 = vadd.f32 %v1147_v12, %v1142_v43 }
 0x20d   : > { %v1149_v24 = vadd.f32 %v1148_v20, %v3135_v1  ;;  %v2730_v20 = vld [vmem:[%s3491_s9 + $0x8] sm:$0xff]  }
 0x20e   : > { %v1240_v45 = vpop.f32.mrb[4].mxu0 }
 0x20f   : > { %v2544_v46 = vpop.f32.mrb[5].mxu0  ;;  %v1312_v58 = vadd.f32 %v2435_v56, %v1240_v45  ;;  %v1153_v25 = vsel %vm1152_vm3, %v1149_v24, 0.0 }
 0x210   : > { %v1243_v47 = vpop.f32.mrb[6].mxu0 }
 0x211   : > { %v2545_v48 = vpop.f32.mrb[7].mxu0  ;;  %v1570_v59 = vpack.c.bf16 %v1312_v58, %v1312_v58 }
 0x216   : > { %v1368_v50 = vpop.f32.mrb[8].mxu0 }
 0x217   : > { %v1440_v51 = vadd.f32 %v2443_v49, %v1368_v50  ;;  %v2560_v52 = vpop.f32.mrb[9].mxu0  ;;  %v2727_v49 = vld [vmem:[%s3489_s27] sm:$0xff]   ;;  %v2728_v50 = vld [vmem:[%s3489_s27 + $0x8] sm:$0xff]  }
 0x218   : > { %v1371_v53 = vpop.f32.mrb[10].mxu0 }
 0x219   : > { %v1572_v54 = vpack.c.bf16 %v1440_v51, %v1440_v51  ;;  %v2561_v55 = vpop.f32.mrb[11].mxu0 }
 0x21b   : > { %v1579_v57 = vsel %vm1574_vm4, %v1572_v54, 0 }
 0x21c   : > { %2587 = vmatpush3.bf16.xpose.msra.mxu0 %v1579_v57  ;;  %v1661_v60 = vpop.f32.mrb[12].mxu1 }
 0x21d   : > { %2598 = vmatprep.subr.bf16.mxu0 %v2847_v4  ;;  %v2596_v62 = vpop.f32.mrb[13].mxu1  ;;  %v1668_v13 = vmul.f32 0.25, %v1661_v60 }
 0x21e   : > { %v1664_v63 = vpop.f32.mrb[14].mxu1  ;;  %v1496_v0 = vpop.f32.mrb[12].mxu0 }
 0x21f   : > { %v2597_v2 = vpop.f32.mrb[15].mxu1  ;;  %v1568_v3 = vadd.f32 %v2451_v61, %v1496_v0  ;;  %v2576_v5 = vpop.f32.mrb[13].mxu0  ;;  %v1670_v22 = vadd.f32 %v1668_v13, %v1181_v17 }
 0x220   : > { %v1499_v6 = vpop.f32.mrb[14].mxu0 }
 0x221   : > { %v1695_v7 = vpack.c.bf16 %v1568_v3, %v1568_v3  ;;  %v2577_v8 = vpop.f32.mrb[15].mxu0  ;;  %v1674_v23 = vsel %vm999_vm1, %v1670_v22, -inf  ;;  %v2461_v6 = vld [vmem:[%s3490_s4] ss:$0 sm:$0xff] }
 0x223   : > { %2589 = vmatmul.mubr.msk.bf16.vlgmr.msra.gmra.mrb[16].mxu0 %vm1574_vm4, %v1570_v59  ;;  %v1702_v9 = vsel %vm1700_vm5, %v1695_v7, 0 }
 0x224   : > { %2600 = vmatprep.mubr.msk.bf16.mxu0 %vm2848_vm2, %v2847_v4  ;;  %2599 = vmatpush3.bf16.msra.mxu0 %v1702_v9 }
 0x225   : > { %2610 = vmatprep.subr.bf16.mxu0 %v2847_v4 }
 0x2f6   : > { %v1615_v11 = vpop.f32.mrb[16].mxu0 }
 0x2f7   : > { %v1667_v14 = vmul.f32 0.25, %v1615_v11  ;;  %v2590_v15 = vpop.f32.mrb[17].mxu0 }
 0x2f8   : > { %v1618_v16 = vpop.f32.mrb[18].mxu0 }
 0x2f9   : > { %v2591_v18 = vpop.f32.mrb[19].mxu0  ;;  %v1669_v19 = vadd.f32 %v1667_v14, %v1181_v17 }
 0x2fb   : > { %v1671_v21 = vsel %vm999_vm1, %v1669_v19, -inf }
 0x2fc   : > { %1672 = vmax.xlane.f32.xlu0 %v1671_v21 }
 0x300   : > { %1675 = vmax.xlane.f32.xlu0 %v1674_v23 }
 0x304   : > { %1154 = vadd.xlane.f32.xlu0 %v1153_v25 }
 0x389   : > { %v1673_v26 = vpop.xlane.xlu0 %1672 }
 0x38a   : > { %v1677_v27 = vsub.f32 %v1669_v19, %v1673_v26  ;;  %v2729_v19 = vld [vmem:[%s3491_s9] sm:$0xff]  }
 0x38c   : > { %v1679_v28 = vmul.f32 1.442695, %v1677_v27 }
 0x38d   : > { %v1676_v29 = vpop.xlane.xlu0 %1675 }
 0x38e   : > { %2735 = vpow2.f32 %v1679_v28  ;;  %v1678_v30 = vsub.f32 %v1670_v22, %v1676_v29  ;;  %v2427_v28 = vld [vmem:[%s3493_s25] ss:$0 sm:$0xff] }
 0x390   : > { %v1681_v31 = vmul.f32 1.442695, %v1678_v30 }
 0x391   : > { %v1155_v32 = vpop.xlane.xlu0 %1154 }
 0x392   : > { %2737 = vpow2.f32 %v1681_v31  ;;  %v1157_v33 = vmul.f32 0.03125, %v1155_v32  ;;  %v2462_v31 = vld [vmem:[%s3495_s21] ss:$0 sm:$0xff] }
 0x393   : > { %v2428_v32 = vld [vmem:[%s3497_s6] ss:$0 sm:$0xff] }
 0x394   : > { %v3238_v34 = vsub.f32 %v1149_v24, %v1157_v33 }
 0x396   : > { %v1159_v35 = vmul.f32 %v3238_v34, %v3238_v34 }
 0x398   : > { %v2736_v36 = vpop.eup %2735  ;;  %v1160_v37 = vsel %vm1152_vm3, %v1159_v35, 0.0 }
 0x399   : > { %1161 = vadd.xlane.f32.xlu0 %v1160_v37  ;;  %v1683_v38 = vsel %vm999_vm1, %v2736_v36, 0.0 }
 0x39a   : > { %1684 = vadd.xlane.f32.xlu1 %v1683_v38 }
 0x39c   : > { %v2738_v39 = vpop.eup %2737 }
 0x39d   : > { %v1686_v40 = vsel %vm999_vm1, %v2738_v39, 0.0 }
 0x39e   : > { %1687 = vadd.xlane.f32.xlu1 %v1686_v40 }
 0x427   : > { %v1685_v41 = vpop.xlane.xlu1 %1684 }
 0x428   : > { %2739 = vrcp.f32 %v1685_v41 }
 0x42b   : > { %v1688_v42 = vpop.xlane.xlu1 %1687 }
 0x42c   : > { %2741 = vrcp.f32 %v1688_v42  ;;  %v2731_v42 = vld [vmem:[%s3116_s26] sm:$0xff]  }
 0x432   : > { %v2740_v43 = vpop.eup %2739 }
 0x433   : > { %v1691_v44 = vmul.f32 %v2740_v43, %v2736_v36  ;;  %v2732_v43 = vld [vmem:[%s3116_s26 + $0x8] sm:$0xff]  }
 0x435   : > { %v1693_v45 = vpack.c.bf16 %v1691_v44, %v1691_v44  ;;  %v2733_v44 = vld [vmem:[%s3116_s26 + $0x10] sm:$0xff]  }
 0x436   : > { %v2742_v46 = vpop.eup %2741 }
 0x437   : > { %v1692_v47 = vmul.f32 %v2742_v46, %v2738_v39  ;;  %2601 = vmatmul.mubr.msk.bf16.vlgmr.msra.gmra.mrb[20].mxu0 %vm999_vm1, %v1693_v45  ;;  %v2734_v45 = vld [vmem:[%s3116_s26 + $0x18] sm:$0xff]   ;;  %v2464_v46 = vld [vmem:[%s973_s12] ss:$0 sm:$0xff] }
 0x438   : > { %2612 = vmatprep.mubr.msk.bf16.mxu0 %vm2848_vm2, %v2847_v4  ;;  %2611 = vmatpush3.bf16.msra.mxu0 %v2727_v49 }
 0x439   : > { %v1694_v48 = vpack.c.bf16 %v1692_v47, %v1692_v47  ;;  %2622 = vmatprep.subr.bf16.mxu0 %v2847_v4 }
 0x43b   : > { %2607 = vmatmul.mubr.msk.bf16.vlgmr.msra.gmra.mrb[16].mxu1 %vm999_vm1, %v1694_v48 }
 0x43c   : > { %2618 = vmatprep.mubr.msk.bf16.mxu1 %vm2848_vm2, %v2847_v4  ;;  %2617 = vmatpush3.bf16.msra.mxu1 %v2728_v50 }
 0x43d   : > { %2630 = vmatprep.subr.bf16.mxu1 %v2847_v4 }
 0x50a   : > { %v1738_v51 = vpop.f32.mrb[20].mxu0 }
 0x50b   : > { %v1794_v52 = vpack.c.bf16 %v1738_v51, %v1738_v51  ;;  %v2602_v53 = vpop.f32.mrb[21].mxu0 }
 0x50c   : > { %v1741_v54 = vpop.f32.mrb[22].mxu0 }
 0x50d   : > { %v2603_v55 = vpop.f32.mrb[23].mxu0  ;;  %2613 = vmatmul.mubr.msk.bf16.vlgmr.msra.gmra.mrb[24].mxu0 %vm1574_vm4, %v1794_v52 }
 0x50e   : > { %v1784_v56 = vpop.f32.mrb[16].mxu1  ;;  %2626 = vmatprep.mubr.msk.bf16.mxu0 %vm2848_vm2, %v2847_v4  ;;  %2623 = vmatpush3.bf16.msra.mxu0 %v2729_v19 }
 0x50f   : > { %v1795_v57 = vpack.c.bf16 %v1784_v56, %v1784_v56  ;;  %v2608_v58 = vpop.f32.mrb[17].mxu1  ;;  %2624 = vmatprep.subr.bf16.mxu0 %v2847_v4 }
 0x510   : > { %v1787_v59 = vpop.f32.mrb[18].mxu1 }
 0x511   : > { %v2609_v60 = vpop.f32.mrb[19].mxu1  ;;  %2619 = vmatmul.mubr.msk.bf16.vlgmr.msra.gmra.mrb[20].mxu1 %vm1574_vm4, %v1795_v57 }
 0x512   : > { %2638 = vmatprep.mubr.msk.bf16.mxu1 %vm2848_vm2, %v2847_v4  ;;  %2625 = vmatpush3.bf16.msra.mxu0 %v2730_v20 }
 0x513   : > { %2631 = vmatpush3.bf16.msra.mxu1 %v2731_v42 }
 0x514   : > { %2632 = vmatprep.subr.bf16.mxu1 %v2847_v4 }
 0x517   : > { %2633 = vmatpush3.bf16.msra.mxu1 %v2732_v43 }
 0x518   : > { %2634 = vmatprep.subr.bf16.mxu1 %v2847_v4 }
 0x51b   : > { %2635 = vmatpush3.bf16.msra.mxu1 %v2733_v44 }
 0x51c   : > { %2636 = vmatprep.subr.bf16.mxu1 %v2847_v4 }
 0x51f   : > { %2637 = vmatpush3.bf16.msra.mxu1 %v2734_v45 }
 0x5e0   : > { %v1839_v61 = vpop.f32.mrb[24].mxu0 }
 0x5e1   : > { %v2614_v62 = vpop.f32.mrb[25].mxu0  ;;  %v1894_v3 = vsel %vm1152_vm3, %v1839_v61, 0.0  ;;  %v2468_v61 = vld [vmem:[%s981_s14] ss:$0 sm:$0xff]  ;;  %s3502_s14 = sld [smem:[#allocation6_spill]] }
 0x5e2   : > { %v1842_v63 = vpop.f32.mrb[26].mxu0 }
 0x5e3   : > { %v2615_v0 = vpop.f32.mrb[27].mxu0 }
 0x5e4   : > { %v1888_v2 = vpop.f32.mrb[20].mxu1 }
 0x5e5   : > { %v1895_v5 = vsel %vm1152_vm3, %v1888_v2, 0.0  ;;  %v2620_v7 = vpop.f32.mrb[21].mxu1 }
 0x5e6   : > { %v1896_v8 = vadd.f32 %v1895_v5, %v1894_v3  ;;  %v1891_v9 = vpop.f32.mrb[22].mxu1 }
 0x5e7   : > { %v2621_v10 = vpop.f32.mrb[23].mxu1 }
 0x5e8   : > { %v1904_v11 = vadd.f32 %v2461_v6, %v1896_v8 }
 0x5ea   : > { %v1905_v12 = vadd.f32 %v1904_v11, %v3135_v1  ;;  %v1162_v1 = vpop.xlane.xlu0 %1161 }
 0x5eb   : > { %v1163_v21 = vmul.f32 0.03125, %v1162_v1 }
 0x5ec   : > { %v1908_v13 = vsel %vm1152_vm3, %v1905_v12, 0.0 }
 0x5ed   : > { %1909 = vadd.xlane.f32.xlu1 %v1908_v13  ;;  %v1164_v22 = vadd.f32 1e-12, %v1163_v21 }
 0x5ef   : > { %2743 = vrsqrt.f32 %v1164_v22 }
 0x5f9   : > { %v2744_v26 = vpop.eup %2743 }
 0x5fa   : > { %v1166_v27 = vmul.f32 %v2744_v26, %v3238_v34  ;;  %v2463_v34 = vld [vmem:[%s3499_s28] ss:$0 sm:$0xff] }
 0x5fc   : > { %v1173_v29 = vmul.f32 %v2427_v28, %v1166_v27 }
 0x5fe   : > { %v1180_v36 = vadd.f32 %v2428_v32, %v1173_v29 }
 0x600   : > { %v1935_v38 = vmul.f32 0.7, %v1180_v36 }
 0x67a   : > { %v1910_v14 = vpop.xlane.xlu1 %1909 }
 0x67b   : > { %v1911_v15 = vmul.f32 0.03125, %v1910_v14 }
 0x67d   : > { %v1912_v16 = vsub.f32 %v1905_v12, %v1911_v15 }
 0x67f   : > { %v1913_v17 = vmul.f32 %v1912_v16, %v1912_v16 }
 0x681   : > { %v1914_v18 = vsel %vm1152_vm3, %v1913_v17, 0.0 }
 0x682   : > { %1915 = vadd.xlane.f32.xlu1 %v1914_v18  ;;  %v2475_v18 = vld [vmem:[%s987_s16] ss:$0 sm:$0xff]  ;;  %s2849_s16 = smov [#allocation2]  }
 0x683   : > { %s2755_s30 = sshll.u32 %s2849_s16, 4  ;;  %s2756_s30 = int_to_ptr.vmem [resolvable:$false] %s2755_s30 }
 0x684   : > { %s2757_s1 = scalar_lea.vmem %s2756_s30, 256  ;;  %p2758_p5 = scmp.lt.s32.totalorder %s3332_s7, %s2756_s30 }
 0x685   : > { %p2759_p6 = scmp.lt.s32.totalorder %s2757_s1, %s2751_s2 }
 0x687   : > { %p2760_p7 = por %p2759_p6, %p2758_p5 }
 0x689   : > { %p2761_p8 = pnand %p2760_p7, %p2754_p4 }
 0x70f   : > { %v1916_v23 = vpop.xlane.xlu1 %1915 }
 0x710   : > { %v1917_v24 = vmul.f32 0.03125, %v1916_v23 }
 0x712   : > { %v1918_v25 = vadd.f32 1e-12, %v1917_v24 }
 0x714   : > { %2745 = vrsqrt.f32 %v1918_v25 }
 0x71e   : > { %v2746_v30 = vpop.eup %2745 }
 0x71f   : > { %v1920_v33 = vmul.f32 %v2746_v30, %v1912_v16  ;;  %v2474_v16 = vld [vmem:[%s984_s15] ss:$0 sm:$0xff]  ;;  %s3507_s15 = sand.u32 1, %s3502_s14  }
 0x720   : > { %s2130_s6 = scalar_lea.sflag [#allocation3], %s3507_s15 }
 0x721   : > { %v1927_v35 = vmul.f32 %v2462_v31, %v1920_v33 }
 0x723   : > { %v1934_v37 = vadd.f32 %v2463_v34, %v1927_v35 }
 0x725   : > { %v1936_v39 = vmul.f32 0.3, %v1934_v37 }
 0x727   : > { %v1937_v40 = vadd.f32 %v1936_v39, %v1935_v38 }
 0x729   : > { %v1950_v41 = vpack.c.bf16 %v1937_v40, %v1937_v40 }
 0x72b   : > { %2627 = vmatmul.mubr.msk.bf16.vlgmr.msra.gmra.mrb[28].mxu0 %vm1152_vm3, %v1950_v41 }
 0x7fe   : > { %v2007_v47 = vpop.f32.mrb[28].mxu0 }
 0x7ff   : > { %v2008_v48 = vadd.f32 %v2464_v46, %v2007_v47  ;;  %v2628_v49 = vpop.f32.mrb[29].mxu0 }
 0x800   : > { %v2010_v50 = vpop.f32.mrb[30].mxu0 }
 0x801   : > { %v2014_v51 = vmul.f32 0.044715, %v2008_v48  ;;  %v2629_v52 = vpop.f32.mrb[31].mxu0  ;;  %v2013_v4 = vmul.f32 0.5, %v2008_v48 }
 0x803   : > { %v2015_v53 = vmul.f32 %v2014_v51, %v2008_v48 }
 0x805   : > { %v2016_v54 = vmul.f32 %v2015_v53, %v2008_v48 }
 0x807   : > { %v2017_v55 = vadd.f32 %v2016_v54, %v2008_v48 }
 0x809   : > { %v2018_v56 = vmul.f32 0.7978846, %v2017_v55 }
 0x80b   : > { %2747 = vtanh.f32 %v2018_v56 }
 0x815   : > { %v2748_v57 = vpop.eup %2747 }
 0x816   : > { %v2020_v58 = vadd.f32 1.0, %v2748_v57 }
 0x818   : > { %v2021_v59 = vmul.f32 %v2020_v58, %v2013_v4 }
 0x81a   : > { %v2022_v60 = vpack.c.bf16 %v2021_v59, %v2021_v59 }
 0x81c   : > { %2639 = vmatmul.mubr.msk.bf16.vlgmr.msra.gmra.mrb[24].mxu1 %vm2054_vm6, %v2022_v60 }
 0x8ef   : > { %v2092_v62 = vpop.f32.mrb[24].mxu1 }
 0x8f0   : > { %v2093_v63 = vadd.f32 %v2468_v61, %v2092_v62  ;;  %v2640_v0 = vpop.f32.mrb[25].mxu1 }
 0x8f1   : > { %v2095_v2 = vpop.f32.mrb[26].mxu1 }
 0x8f2   : > { %v2641_v3 = vpop.f32.mrb[27].mxu1  ;;  %v2098_v5 = vadd.f32 %v2093_v63, %v1937_v40 }
 0x8f4   : > { %v2101_v6 = vsel %vm1152_vm3, %v2098_v5, 0.0 }
 0x8f5   : > { %2102 = vadd.xlane.f32.xlu0 %v2101_v6 }
 0x982   : > { %v2103_v7 = vpop.xlane.xlu0 %2102 }
 0x983   : > { %v2104_v8 = vmul.f32 0.03125, %v2103_v7 }
 0x985   : > { %v2105_v9 = vsub.f32 %v2098_v5, %v2104_v8 }
 0x987   : > { %v2106_v10 = vmul.f32 %v2105_v9, %v2105_v9 }
 0x989   : > { %v2107_v11 = vsel %vm1152_vm3, %v2106_v10, 0.0 }
 0x98a   : > { %2108 = vadd.xlane.f32.xlu1 %v2107_v11 }
 0xa17   : > { %v2109_v12 = vpop.xlane.xlu1 %2108 }
 0xa18   : > { %v2110_v13 = vmul.f32 0.03125, %v2109_v12 }
 0xa1a   : > { %v2111_v14 = vadd.f32 1e-12, %v2110_v13 }
 0xa1c   : > { %2749 = vrsqrt.f32 %v2111_v14 }
 0xa26   : > { %v2750_v15 = vpop.eup %2749 }
 0xa27   : > { %v2113_v17 = vmul.f32 %v2750_v15, %v2105_v9 }
 0xa29   : > { %v2120_v19 = vmul.f32 %v2474_v16, %v2113_v17 }
 0xa2b   : > { %v2127_v20 = vadd.f32 %v2475_v18, %v2120_v19 }
 0xa2d   : > { %2128 = vst.msk [vmem:[%s3130_s11] sm:$0xff] %vm1152_vm3, %v2127_v20 }
 0xa2e   : > { %2764 = shalt.err (!%p2761_p8)
}
 0xa2f   : > { %s2765_s11 = scalar_lea.hbm %s3330_s0, 128  ;;  %s2769_s19 = scalar_lea.hbm %s3506_s18, 256 }
 0xa30   : > { %p2766_p10 = scmp.ne.s32.totalorder %s3330_s0, %s2765_s11  ;;  %p2770_p13 = scmp.lt.u32.totalorder %s3330_s0, %s3506_s18 }
 0xa31   : > { %p2771_p0 = scmp.lt.u32.totalorder %s2769_s19, %s2765_s11  ;;  %p2773_p2 = scmp.lt.u32.totalorder %s2765_s11, %s3330_s0 }
 0xa32   : > { %p2767_p11 = pnand %p2766_p10, %p3014_p3 }
 0xa33   : > { %p2772_p1 = por %p2771_p0, %p2770_p13 }
 0xa34   : > { %p2768_p12 = pneg %p2767_p11 }
 0xa35   : > { %p2774_p4 = por %p2773_p2, %p2772_p1 }
 0xa37   : > { %p2775_p5 = pnand %p2774_p4, %p2768_p12 }
 0xa39   : > { %2778 = shalt.err (!%p2775_p5)
}
 0xa3a   : > { %2642 = dma.vmem_to_hbm [thread:$0]  (%p3014_p3), %s3332_s7, 128, %s3330_s0, %s2130_s6  }
 0xa3b PF: > { %s3508_s26 = sld [smem:[#allocation12_spill]]  ;;  %s3509_s23 = sld [smem:[#allocation5_spill]] }
 0xa41   : > { %p2648_p6 = scmp.ge.s32.totalorder %s3508_s26, 2  ;;  %s2155_s14 = sand.u32 1, %s3509_s23  }
 0xa42   : > { %s2156_s9 = scalar_lea.sflag [#allocation3], %s2155_s14 }
 0xa43   : > { %p2645_p7 = pnand %p2648_p6, %p3024_p9 }
 0xa45   : > { %2812 = dma.done.wait (!%p2645_p7), %s2156_s9, 128  }
 0xa46   : > { %2814 = vsyncadd (!%p2645_p7), %s2156_s9, 4294967168  ;;  %s35_s1 = sadd.s32 1, %s3508_s26   ;;  %s3511_s3 = sld [smem:[#allocation6_spill]] }
 0xa47   : > { %p32_p8 = scmp.ge.s32.totalorder %s35_s1, 6   ;;  %s3512_s28 = sld [smem:[#allocation7_spill]] }
 0xa48   : > { %s3513_s29 = sld [smem:[#allocation17_spill]]  ;;  %s3514_s30 = sld [smem:[#allocation10_spill]] }
 0xa49   : > { %s3515_s4 = sld [smem:[#allocation11_spill]]  ;;  %s3516_s0 = sld [smem:[#allocation13_spill]] }
 0xa4a   : > { %s3517_s23 = sld [smem:[#allocation15_spill]]  ;;  %34 = sbr.rel (!%p32_p8) target bundleno = 27 (0x1b), region = 201 }
 0xa51   :  { %2161 = vsyncpa [#allocation3], 1 }
 0xa52   :  { %2163 = vsyncpa [#allocation3 + $0x1], 1 }

</bundles_post_ra>
